<compile_context>
chip_gen: v6e
topology: v6e:2x2x1
jax: 0.10.0
libtpu: 0.0.40
codegen_flags: <defaults>
</compile_context>

<pallas_src>
import math

import jax
import jax.numpy as jnp
from jax.experimental import pallas as pl
from jax.experimental.pallas import tpu as pltpu  # noqa: F401  (kept for TPU-specific tuning hooks)

# ----- model config (small, consistent with the module's __init__ signature) -----
BATCH = 2
SEQ = 8
D_MODEL = 32
NUM_HEADS = 4
HEAD_DIM = D_MODEL // NUM_HEADS
FFN_HIDDEN = 64
EPS = 1e-5
NEG_INF = -1e9
BS = BATCH * SEQ


# ------------------------- parameter-slab layout (static, shared by packer & kernel) -------------------------
def _build_layout():
    layout = {}
    row = 0

    def alloc(name, nrows, ncols):
        nonlocal row
        layout[name] = (row, row + nrows, ncols)
        row += nrows

    # weight matrices, each at lane offset 0 (sublane-stacked)
    for name in ("wq_s", "wk_s", "wv_s", "wo1", "wq_c", "wk_c", "wv_c", "wo2"):
        alloc(name, D_MODEL, D_MODEL)
    alloc("wf1", D_MODEL, FFN_HIDDEN)
    alloc("wf2", FFN_HIDDEN, D_MODEL)
    # bias / layernorm vectors: one row each
    for name in ("bq_s", "bk_s", "bv_s", "bo1", "g1", "b1n",
                 "bq_c", "bk_c", "bv_c", "bo2", "g2", "b2n"):
        alloc(name, 1, D_MODEL)
    alloc("bf1", 1, FFN_HIDDEN)
    for name in ("bf2", "g3", "b3n"):
        alloc(name, 1, D_MODEL)

    rows = -(-row // 8) * 8  # pad to sublane multiple
    return layout, rows


_LAYOUT, SLAB_ROWS = _build_layout()
SLAB_COLS = 128  # lane-dense slab width


# ------------------------- in-kernel helpers -------------------------
def _layernorm(h, gamma, beta):
    mean = jnp.mean(h, axis=-1, keepdims=True)
    var = jnp.mean((h - mean) ** 2, axis=-1, keepdims=True)
    inv = jax.lax.rsqrt(var + EPS)
    return gamma * ((h - mean) * inv) + beta


def _softmax(s):
    m = jnp.max(s, axis=-1, keepdims=True)
    e = jnp.exp(s - m)
    denom = jnp.sum(e, axis=-1, keepdims=True)
    # multiply by reciprocal instead of dividing; approx=False keeps exact f32 parity.
    return e * pl.reciprocal(denom, approx=False)


# ------------------------- fused decoder-layer kernel -------------------------
def decoder_layer_kernel(yx_ref, mask_ref, p_ref, out_ref):
    def blk(name):
        r0, r1, c = _LAYOUT[name]
        return p_ref[r0:r1, 0:c]          # static slice of the param slab (free view)

    def mha(q2, k2, v2, wo_name, bo_name, mask_b):
        """q2/k2/v2: (B*S, D), heads contiguous along last dim, q pre-scaled.
        Output projection wo is folded into the head loop -> no lane concat."""
        q3 = q2.reshape(BATCH, SEQ, D_MODEL)
        k3 = k2.reshape(BATCH, SEQ, D_MODEL)
        v3 = v2.reshape(BATCH, SEQ, D_MODEL)
        wo_r0, _, _ = _LAYOUT[wo_name]
        acc = jnp.zeros((BS, D_MODEL), jnp.float32)
        for h in range(NUM_HEADS):
            sl = slice(h * HEAD_DIM, (h + 1) * HEAD_DIM)
            s = jnp.einsum("bqd,bkd->bqk", q3[:, :, sl], k3[:, :, sl],
                           preferred_element_type=jnp.float32)
            if mask_b is not None:
                s = s + mask_b            # broadcast hoisted out of the loop
            p = _softmax(s)
            o_h = jnp.einsum("bqk,bkd->bqd", p, v3[:, :, sl],
                             preferred_element_type=jnp.float32)
            # fold output projection: sublane (row) slice of wo in the slab
            wo_h = p_ref[wo_r0 + h * HEAD_DIM: wo_r0 + (h + 1) * HEAD_DIM, 0:D_MODEL]
            acc = acc + jnp.dot(o_h.reshape(BS, HEAD_DIM), wo_h,
                                preferred_element_type=jnp.float32)
        return acc + blk(bo_name)

    y = yx_ref[0:BS, :]                   # (B*S, D) decoder stream
    x = yx_ref[BS:2 * BS, :]              # (B*S, D) encoder memory
    mask_b = mask_ref[...][None, :, :]    # (1, S, S) additive mask, built once

    # ---------- 1) masked multi-head self attention on y ----------
    q = jnp.dot(y, blk("wq_s"), preferred_element_type=jnp.float32) + blk("bq_s")
    k = jnp.dot(y, blk("wk_s"), preferred_element_type=jnp.float32) + blk("bk_s")
    v = jnp.dot(y, blk("wv_s"), preferred_element_type=jnp.float32) + blk("bv_s")
    attn = mha(q, k, v, "wo1", "bo1", mask_b)
    # dropout1 is identity in deterministic eval mode
    y = _layernorm(y + attn, blk("g1"), blk("b1n"))

    # ---------- 2) multi-head cross attention (q from y, k/v from x, no mask) ----------
    q = jnp.dot(y, blk("wq_c"), preferred_element_type=jnp.float32) + blk("bq_c")
    k = jnp.dot(x, blk("wk_c"), preferred_element_type=jnp.float32) + blk("bk_c")
    v = jnp.dot(x, blk("wv_c"), preferred_element_type=jnp.float32) + blk("bv_c")
    attn = mha(q, k, v, "wo2", "bo2", None)
    # dropout2 is identity
    y = _layernorm(y + attn, blk("g2"), blk("b2n"))

    # ---------- 3) position-wise feed-forward ----------
    h1 = jnp.dot(y, blk("wf1"), preferred_element_type=jnp.float32) + blk("bf1")
    h1 = jnp.maximum(h1, 0.0)  # ReLU (inner dropout is identity)
    h2 = jnp.dot(h1, blk("wf2"), preferred_element_type=jnp.float32) + blk("bf2")
    # dropout3 is identity
    y = _layernorm(y + h2, blk("g3"), blk("b3n"))

    out_ref[...] = y.astype(out_ref.dtype)


# ------------------------- host-side param packing -------------------------
def _head_part_cols(n_parts, part):
    """Column indices that select `part` of every head from a per-head
    interleaved [p0_h | p1_h | ...] layout with HEAD_DIM-wide parts."""
    return jnp.arange(NUM_HEADS * n_parts * HEAD_DIM).reshape(
        NUM_HEADS, n_parts, HEAD_DIM)[:, part, :].reshape(-1)


def pack_params(p):
    """One-time host-side repack of all weights/biases/LN params into a single
    lane-dense (SLAB_ROWS, 128) f32 slab. Per-head interleaved QKV / KV columns
    become contiguous per-head blocks, and the 1/sqrt(head_dim) attention scale
    is folded into the Q projections."""
    scale = 1.0 / math.sqrt(HEAD_DIM)

    entries = {
        # self attention (split the packed per-head [q|k|v] interleave)
        "wq_s": p["wqkv"][:, _head_part_cols(3, 0)] * scale,
        "wk_s": p["wqkv"][:, _head_part_cols(3, 1)],
        "wv_s": p["wqkv"][:, _head_part_cols(3, 2)],
        "bq_s": p["bqkv"][:, _head_part_cols(3, 0)] * scale,
        "bk_s": p["bqkv"][:, _head_part_cols(3, 1)],
        "bv_s": p["bqkv"][:, _head_part_cols(3, 2)],
        "wo1": p["wo1"], "bo1": p["bo1"], "g1": p["g1"], "b1n": p["b1n"],
        # cross attention (wq already head-contiguous; split per-head [k|v])
        "wq_c": p["wq"] * scale, "bq_c": p["bq"] * scale,
        "wk_c": p["wkv"][:, _head_part_cols(2, 0)],
        "wv_c": p["wkv"][:, _head_part_cols(2, 1)],
        "bk_c": p["bkv"][:, _head_part_cols(2, 0)],
        "bv_c": p["bkv"][:, _head_part_cols(2, 1)],
        "wo2": p["wo2"], "bo2": p["bo2"], "g2": p["g2"], "b2n": p["b2n"],
        # feed-forward + final norm
        "wf1": p["wf1"], "bf1": p["bf1"], "wf2": p["wf2"], "bf2": p["bf2"],
        "g3": p["g3"], "b3n": p["b3n"],
    }

    slab = jnp.zeros((SLAB_ROWS, SLAB_COLS), jnp.float32)
    for name, val in entries.items():
        r0, r1, c = _LAYOUT[name]
        slab = slab.at[r0:r1, 0:c].set(
            jnp.asarray(val, jnp.float32).reshape(r1 - r0, c))
    return slab


# ------------------------- wrapper -------------------------
def decoder_layer(y, x, mask, param_slab):
    B, S, D = y.shape
    # fuse decoder stream + encoder memory into one lane-dense activation slab
    yx = jnp.concatenate([y.reshape(B * S, D), x.reshape(B * S, D)], axis=0)

    # No grid: single invocation, whole arrays resident in VMEM (<250 KB total),
    # 3 input DMAs + 1 output DMA.
    out2 = pl.pallas_call(
        decoder_layer_kernel,
        out_shape=jax.ShapeDtypeStruct((B * S, D), jnp.float32),
    )(yx, mask, param_slab)
    return out2.reshape(B, S, D)


# -------- parameter init (deterministic, torch-Linear-style, per-head interleaved) --------
def init_params(key):
    def linear(key, fan_in, fan_out):
        k1, k2 = jax.random.split(key)
        bound = 1.0 / math.sqrt(fan_in)
        w = jax.random.uniform(k1, (fan_in, fan_out), jnp.float32, -bound, bound)
        b = jax.random.uniform(k2, (1, fan_out), jnp.float32, -bound, bound)
        return w, b

    keys = jax.random.split(key, 6)
    p = {}
    p["wqkv"], p["bqkv"] = linear(keys[0], D_MODEL, 3 * D_MODEL)   # per-head [q|k|v]
    p["wo1"], p["bo1"] = linear(keys[1], D_MODEL, D_MODEL)
    p["wq"], p["bq"] = linear(keys[2], D_MODEL, D_MODEL)
    p["wkv"], p["bkv"] = linear(keys[3], D_MODEL, 2 * D_MODEL)     # per-head [k|v]
    p["wo2"], p["bo2"] = linear(keys[4], D_MODEL, D_MODEL)
    p["wf1"], p["bf1"] = linear(keys[5], D_MODEL, FFN_HIDDEN)
    kf2 = jax.random.fold_in(key, 1234)
    p["wf2"], p["bf2"] = linear(kf2, FFN_HIDDEN, D_MODEL)
    for name in ("g1", "g2", "g3"):
        p[name] = jnp.ones((1, D_MODEL), jnp.float32)
    for name in ("b1n", "b2n", "b3n"):
        p[name] = jnp.zeros((1, D_MODEL), jnp.float32)
    return p


# ------------------------- pure-JAX reference (original per-head layout) -------------------------
def reference(y, x, mask, p):
    scale = 1.0 / math.sqrt(HEAD_DIM)

    def one(yb, xb):
        qkv = yb @ p["wqkv"] + p["bqkv"]
        outs = []
        for h in range(NUM_HEADS):
            base = h * 3 * HEAD_DIM
            q = qkv[:, base:base + HEAD_DIM]
            k = qkv[:, base + HEAD_DIM:base + 2 * HEAD_DIM]
            v = qkv[:, base + 2 * HEAD_DIM:base + 3 * HEAD_DIM]
            s = q @ k.T * scale + mask
            outs.append(jax.nn.softmax(s, axis=-1) @ v)
        attn = jnp.concatenate(outs, axis=-1) @ p["wo1"] + p["bo1"]
        yb = _layernorm(yb + attn, p["g1"], p["b1n"])

        q_all = yb @ p["wq"] + p["bq"]
        kv = xb @ p["wkv"] + p["bkv"]
        outs = []
        for h in range(NUM_HEADS):
            q = q_all[:, h * HEAD_DIM:(h + 1) * HEAD_DIM]
            base = h * 2 * HEAD_DIM
            k = kv[:, base:base + HEAD_DIM]
            v = kv[:, base + HEAD_DIM:base + 2 * HEAD_DIM]
            s = q @ k.T * scale
            outs.append(jax.nn.softmax(s, axis=-1) @ v)
        attn = jnp.concatenate(outs, axis=-1) @ p["wo2"] + p["bo2"]
        yb = _layernorm(yb + attn, p["g2"], p["b2n"])

        h1 = jnp.maximum(yb @ p["wf1"] + p["bf1"], 0.0)
        h2 = h1 @ p["wf2"] + p["bf2"]
        return _layernorm(yb + h2, p["g3"], p["b3n"])

    return jax.vmap(one)(y, x)


if __name__ == "__main__":
    key = jax.random.PRNGKey(0)
    kx, ky, kp = jax.random.split(key, 3)

    x = jax.random.normal(kx, (BATCH, SEQ, D_MODEL), jnp.float32)  # encoder memory
    y = jax.random.normal(ky, (BATCH, SEQ, D_MODEL), jnp.float32)  # decoder stream
    # additive causal mask (0 on/below diagonal, -1e9 above)
    causal = jnp.tril(jnp.ones((SEQ, SEQ), jnp.float32))
    mask = jnp.where(causal > 0, 0.0, NEG_INF).astype(jnp.float32)

    params = init_params(kp)
    param_slab = pack_params(params)  # one-time host-side repack into one lane-dense slab

    # TODO(synk): dropout (p>0, training mode) has no in-kernel equivalent here; forward is eval-mode.
    out = decoder_layer(y, x, mask, param_slab)
    out = jax.block_until_ready(out)

    ref = reference(y, x, mask, params)
    assert out.shape == (BATCH, SEQ, D_MODEL)
    assert jnp.allclose(out, ref, atol=1e-4, rtol=1e-4), "kernel does not match reference"

    print("KERNEL_OK")
</pallas_src>

<mosaic_0001>
module attributes {stable_mosaic.version = 11 : i64} {
  func.func @decoder_layer_kernel(%arg0: memref<32x32xf32, #tpu.memory_space<vmem>>, %arg1: memref<8x8xf32, #tpu.memory_space<vmem>>, %arg2: memref<368x128xf32, #tpu.memory_space<vmem>>, %arg3: memref<16x32xf32, #tpu.memory_space<vmem>>) attributes {dimension_semantics = [], scalar_prefetch = 0 : i64, scratch_operands = 0 : i64, tpu.core_type = #tpu.core_type<tc>} {
    %c0 = arith.constant 0 : index
    %c0_0 = arith.constant 0 : index
    %0 = vector.load %arg0[%c0, %c0_0] : memref<32x32xf32, #tpu.memory_space<vmem>>, vector<16x32xf32>
    %c16 = arith.constant 16 : index
    %c0_1 = arith.constant 0 : index
    %1 = vector.load %arg0[%c16, %c0_1] : memref<32x32xf32, #tpu.memory_space<vmem>>, vector<16x32xf32>
    %c0_2 = arith.constant 0 : index
    %c0_3 = arith.constant 0 : index
    %2 = vector.load %arg1[%c0_2, %c0_3] : memref<8x8xf32, #tpu.memory_space<vmem>>, vector<8x8xf32>
    %3 = vector.shape_cast %2 : vector<8x8xf32> to vector<1x8x8xf32>
    %c0_4 = arith.constant 0 : index
    %c0_5 = arith.constant 0 : index
    %4 = vector.load %arg2[%c0_4, %c0_5] : memref<368x128xf32, #tpu.memory_space<vmem>>, vector<32x32xf32>
    %cst = arith.constant dense<0.000000e+00> : vector<16x32xf32>
    %5 = tpu.matmul %0, %4, %cst {dimension_numbers = #tpu.dot_dimension_numbers<[1], [0], [0], [1], [0, 0, 1, 1], [], []>} : vector<16x32xf32>, vector<32x32xf32>, vector<16x32xf32> -> vector<16x32xf32>
    %c352 = arith.constant 352 : index
    %c0_6 = arith.constant 0 : index
    %6 = vector.load %arg2[%c352, %c0_6] : memref<368x128xf32, #tpu.memory_space<vmem>>, vector<1x32xf32>
    %7 = vector.broadcast %6 : vector<1x32xf32> to vector<16x32xf32>
    %8 = arith.addf %5, %7 : vector<16x32xf32>
    %c32 = arith.constant 32 : index
    %c0_7 = arith.constant 0 : index
    %9 = vector.load %arg2[%c32, %c0_7] : memref<368x128xf32, #tpu.memory_space<vmem>>, vector<32x32xf32>
    %cst_8 = arith.constant dense<0.000000e+00> : vector<16x32xf32>
    %10 = tpu.matmul %0, %9, %cst_8 {dimension_numbers = #tpu.dot_dimension_numbers<[1], [0], [0], [1], [0, 0, 1, 1], [], []>} : vector<16x32xf32>, vector<32x32xf32>, vector<16x32xf32> -> vector<16x32xf32>
    %c353 = arith.constant 353 : index
    %c0_9 = arith.constant 0 : index
    %11 = vector.load %arg2[%c353, %c0_9] : memref<368x128xf32, #tpu.memory_space<vmem>>, vector<1x32xf32>
    %12 = vector.broadcast %11 : vector<1x32xf32> to vector<16x32xf32>
    %13 = arith.addf %10, %12 : vector<16x32xf32>
    %c64 = arith.constant 64 : index
    %c0_10 = arith.constant 0 : index
    %14 = vector.load %arg2[%c64, %c0_10] : memref<368x128xf32, #tpu.memory_space<vmem>>, vector<32x32xf32>
    %cst_11 = arith.constant dense<0.000000e+00> : vector<16x32xf32>
    %15 = tpu.matmul %0, %14, %cst_11 {dimension_numbers = #tpu.dot_dimension_numbers<[1], [0], [0], [1], [0, 0, 1, 1], [], []>} : vector<16x32xf32>, vector<32x32xf32>, vector<16x32xf32> -> vector<16x32xf32>
    %c354 = arith.constant 354 : index
    %c0_12 = arith.constant 0 : index
    %16 = vector.load %arg2[%c354, %c0_12] : memref<368x128xf32, #tpu.memory_space<vmem>>, vector<1x32xf32>
    %17 = vector.broadcast %16 : vector<1x32xf32> to vector<16x32xf32>
    %18 = arith.addf %15, %17 : vector<16x32xf32>
    %19 = vector.shape_cast %8 : vector<16x32xf32> to vector<2x8x32xf32>
    %20 = vector.shape_cast %13 : vector<16x32xf32> to vector<2x8x32xf32>
    %21 = vector.shape_cast %18 : vector<16x32xf32> to vector<2x8x32xf32>
    %cst_13 = arith.constant 0.000000e+00 : f32
    %22 = vector.broadcast %cst_13 : f32 to vector<16x32xf32>
    %23 = vector.extract_strided_slice %19 {offsets = [0, 0, 0], sizes = [2, 8, 8], strides = [1, 1, 1]} : vector<2x8x32xf32> to vector<2x8x8xf32>
    %24 = vector.extract_strided_slice %20 {offsets = [0, 0, 0], sizes = [2, 8, 8], strides = [1, 1, 1]} : vector<2x8x32xf32> to vector<2x8x8xf32>
    "tpu.trace_start"() <{level = 10 : i32, message = "bqd,bkd->bqk"}> : () -> ()
    %cst_14 = arith.constant dense<0.000000e+00> : vector<2x8x8xf32>
    %25 = tpu.matmul %23, %24, %cst_14 {dimension_numbers = #tpu.dot_dimension_numbers<[2], [2], [1], [1], [0, 0, 0, 1, 1, 1], [0], [0]>} : vector<2x8x8xf32>, vector<2x8x8xf32>, vector<2x8x8xf32> -> vector<2x8x8xf32>
    "tpu.trace_stop"() : () -> ()
    %26 = vector.broadcast %3 : vector<1x8x8xf32> to vector<2x8x8xf32>
    %27 = arith.addf %25, %26 : vector<2x8x8xf32>
    %cst_15 = arith.constant dense<0xFF800000> : vector<2x8xf32>
    %28 = vector.multi_reduction <maximumf>, %27, %cst_15 [2] : vector<2x8x8xf32> to vector<2x8xf32>
    %29 = vector.shape_cast %28 : vector<2x8xf32> to vector<2x8x1xf32>
    %30 = vector.broadcast %29 : vector<2x8x1xf32> to vector<2x8x8xf32>
    %31 = arith.subf %27, %30 : vector<2x8x8xf32>
    %32 = math.exp %31 : vector<2x8x8xf32>
    %cst_16 = arith.constant dense<0.000000e+00> : vector<2x8xf32>
    %33 = vector.multi_reduction <add>, %32, %cst_16 [2] : vector<2x8x8xf32> to vector<2x8xf32>
    %34 = vector.shape_cast %33 : vector<2x8xf32> to vector<2x8x1xf32>
    %35 = tpu.reciprocal %34 : vector<2x8x1xf32> -> vector<2x8x1xf32>
    %36 = vector.broadcast %35 : vector<2x8x1xf32> to vector<2x8x8xf32>
    %37 = arith.mulf %32, %36 : vector<2x8x8xf32>
    %38 = vector.extract_strided_slice %21 {offsets = [0, 0, 0], sizes = [2, 8, 8], strides = [1, 1, 1]} : vector<2x8x32xf32> to vector<2x8x8xf32>
    "tpu.trace_start"() <{level = 10 : i32, message = "bqk,bkd->bqd"}> : () -> ()
    %cst_17 = arith.constant dense<0.000000e+00> : vector<2x8x8xf32>
    %39 = tpu.matmul %37, %38, %cst_17 {dimension_numbers = #tpu.dot_dimension_numbers<[2], [1], [1], [2], [0, 0, 0, 1, 1, 2], [0], [0]>} : vector<2x8x8xf32>, vector<2x8x8xf32>, vector<2x8x8xf32> -> vector<2x8x8xf32>
    "tpu.trace_stop"() : () -> ()
    %c96 = arith.constant 96 : index
    %c0_18 = arith.constant 0 : index
    %40 = vector.load %arg2[%c96, %c0_18] : memref<368x128xf32, #tpu.memory_space<vmem>>, vector<8x32xf32>
    %41 = vector.shape_cast %39 : vector<2x8x8xf32> to vector<16x8xf32>
    %cst_19 = arith.constant dense<0.000000e+00> : vector<16x32xf32>
    %42 = tpu.matmul %41, %40, %cst_19 {dimension_numbers = #tpu.dot_dimension_numbers<[1], [0], [0], [1], [0, 0, 1, 1], [], []>} : vector<16x8xf32>, vector<8x32xf32>, vector<16x32xf32> -> vector<16x32xf32>
    %43 = arith.addf %22, %42 : vector<16x32xf32>
    %44 = vector.extract_strided_slice %19 {offsets = [0, 0, 8], sizes = [2, 8, 8], strides = [1, 1, 1]} : vector<2x8x32xf32> to vector<2x8x8xf32>
    %45 = vector.extract_strided_slice %20 {offsets = [0, 0, 8], sizes = [2, 8, 8], strides = [1, 1, 1]} : vector<2x8x32xf32> to vector<2x8x8xf32>
    "tpu.trace_start"() <{level = 10 : i32, message = "bqd,bkd->bqk"}> : () -> ()
    %cst_20 = arith.constant dense<0.000000e+00> : vector<2x8x8xf32>
    %46 = tpu.matmul %44, %45, %cst_20 {dimension_numbers = #tpu.dot_dimension_numbers<[2], [2], [1], [1], [0, 0, 0, 1, 1, 1], [0], [0]>} : vector<2x8x8xf32>, vector<2x8x8xf32>, vector<2x8x8xf32> -> vector<2x8x8xf32>
    "tpu.trace_stop"() : () -> ()
    %47 = vector.broadcast %3 : vector<1x8x8xf32> to vector<2x8x8xf32>
    %48 = arith.addf %46, %47 : vector<2x8x8xf32>
    %cst_21 = arith.constant dense<0xFF800000> : vector<2x8xf32>
    %49 = vector.multi_reduction <maximumf>, %48, %cst_21 [2] : vector<2x8x8xf32> to vector<2x8xf32>
    %50 = vector.shape_cast %49 : vector<2x8xf32> to vector<2x8x1xf32>
    %51 = vector.broadcast %50 : vector<2x8x1xf32> to vector<2x8x8xf32>
    %52 = arith.subf %48, %51 : vector<2x8x8xf32>
    %53 = math.exp %52 : vector<2x8x8xf32>
    %cst_22 = arith.constant dense<0.000000e+00> : vector<2x8xf32>
    %54 = vector.multi_reduction <add>, %53, %cst_22 [2] : vector<2x8x8xf32> to vector<2x8xf32>
    %55 = vector.shape_cast %54 : vector<2x8xf32> to vector<2x8x1xf32>
    %56 = tpu.reciprocal %55 : vector<2x8x1xf32> -> vector<2x8x1xf32>
    %57 = vector.broadcast %56 : vector<2x8x1xf32> to vector<2x8x8xf32>
    %58 = arith.mulf %53, %57 : vector<2x8x8xf32>
    %59 = vector.extract_strided_slice %21 {offsets = [0, 0, 8], sizes = [2, 8, 8], strides = [1, 1, 1]} : vector<2x8x32xf32> to vector<2x8x8xf32>
    "tpu.trace_start"() <{level = 10 : i32, message = "bqk,bkd->bqd"}> : () -> ()
    %cst_23 = arith.constant dense<0.000000e+00> : vector<2x8x8xf32>
    %60 = tpu.matmul %58, %59, %cst_23 {dimension_numbers = #tpu.dot_dimension_numbers<[2], [1], [1], [2], [0, 0, 0, 1, 1, 2], [0], [0]>} : vector<2x8x8xf32>, vector<2x8x8xf32>, vector<2x8x8xf32> -> vector<2x8x8xf32>
    "tpu.trace_stop"() : () -> ()
    %c104 = arith.constant 104 : index
    %c0_24 = arith.constant 0 : index
    %61 = vector.load %arg2[%c104, %c0_24] : memref<368x128xf32, #tpu.memory_space<vmem>>, vector<8x32xf32>
    %62 = vector.shape_cast %60 : vector<2x8x8xf32> to vector<16x8xf32>
    %cst_25 = arith.constant dense<0.000000e+00> : vector<16x32xf32>
    %63 = tpu.matmul %62, %61, %cst_25 {dimension_numbers = #tpu.dot_dimension_numbers<[1], [0], [0], [1], [0, 0, 1, 1], [], []>} : vector<16x8xf32>, vector<8x32xf32>, vector<16x32xf32> -> vector<16x32xf32>
    %64 = arith.addf %43, %63 : vector<16x32xf32>
    %65 = vector.extract_strided_slice %19 {offsets = [0, 0, 16], sizes = [2, 8, 8], strides = [1, 1, 1]} : vector<2x8x32xf32> to vector<2x8x8xf32>
    %66 = vector.extract_strided_slice %20 {offsets = [0, 0, 16], sizes = [2, 8, 8], strides = [1, 1, 1]} : vector<2x8x32xf32> to vector<2x8x8xf32>
    "tpu.trace_start"() <{level = 10 : i32, message = "bqd,bkd->bqk"}> : () -> ()
    %cst_26 = arith.constant dense<0.000000e+00> : vector<2x8x8xf32>
    %67 = tpu.matmul %65, %66, %cst_26 {dimension_numbers = #tpu.dot_dimension_numbers<[2], [2], [1], [1], [0, 0, 0, 1, 1, 1], [0], [0]>} : vector<2x8x8xf32>, vector<2x8x8xf32>, vector<2x8x8xf32> -> vector<2x8x8xf32>
    "tpu.trace_stop"() : () -> ()
    %68 = vector.broadcast %3 : vector<1x8x8xf32> to vector<2x8x8xf32>
    %69 = arith.addf %67, %68 : vector<2x8x8xf32>
    %cst_27 = arith.constant dense<0xFF800000> : vector<2x8xf32>
    %70 = vector.multi_reduction <maximumf>, %69, %cst_27 [2] : vector<2x8x8xf32> to vector<2x8xf32>
    %71 = vector.shape_cast %70 : vector<2x8xf32> to vector<2x8x1xf32>
    %72 = vector.broadcast %71 : vector<2x8x1xf32> to vector<2x8x8xf32>
    %73 = arith.subf %69, %72 : vector<2x8x8xf32>
    %74 = math.exp %73 : vector<2x8x8xf32>
    %cst_28 = arith.constant dense<0.000000e+00> : vector<2x8xf32>
    %75 = vector.multi_reduction <add>, %74, %cst_28 [2] : vector<2x8x8xf32> to vector<2x8xf32>
    %76 = vector.shape_cast %75 : vector<2x8xf32> to vector<2x8x1xf32>
    %77 = tpu.reciprocal %76 : vector<2x8x1xf32> -> vector<2x8x1xf32>
    %78 = vector.broadcast %77 : vector<2x8x1xf32> to vector<2x8x8xf32>
    %79 = arith.mulf %74, %78 : vector<2x8x8xf32>
    %80 = vector.extract_strided_slice %21 {offsets = [0, 0, 16], sizes = [2, 8, 8], strides = [1, 1, 1]} : vector<2x8x32xf32> to vector<2x8x8xf32>
    "tpu.trace_start"() <{level = 10 : i32, message = "bqk,bkd->bqd"}> : () -> ()
    %cst_29 = arith.constant dense<0.000000e+00> : vector<2x8x8xf32>
    %81 = tpu.matmul %79, %80, %cst_29 {dimension_numbers = #tpu.dot_dimension_numbers<[2], [1], [1], [2], [0, 0, 0, 1, 1, 2], [0], [0]>} : vector<2x8x8xf32>, vector<2x8x8xf32>, vector<2x8x8xf32> -> vector<2x8x8xf32>
    "tpu.trace_stop"() : () -> ()
    %c112 = arith.constant 112 : index
    %c0_30 = arith.constant 0 : index
    %82 = vector.load %arg2[%c112, %c0_30] : memref<368x128xf32, #tpu.memory_space<vmem>>, vector<8x32xf32>
    %83 = vector.shape_cast %81 : vector<2x8x8xf32> to vector<16x8xf32>
    %cst_31 = arith.constant dense<0.000000e+00> : vector<16x32xf32>
    %84 = tpu.matmul %83, %82, %cst_31 {dimension_numbers = #tpu.dot_dimension_numbers<[1], [0], [0], [1], [0, 0, 1, 1], [], []>} : vector<16x8xf32>, vector<8x32xf32>, vector<16x32xf32> -> vector<16x32xf32>
    %85 = arith.addf %64, %84 : vector<16x32xf32>
    %86 = vector.extract_strided_slice %19 {offsets = [0, 0, 24], sizes = [2, 8, 8], strides = [1, 1, 1]} : vector<2x8x32xf32> to vector<2x8x8xf32>
    %87 = vector.extract_strided_slice %20 {offsets = [0, 0, 24], sizes = [2, 8, 8], strides = [1, 1, 1]} : vector<2x8x32xf32> to vector<2x8x8xf32>
    "tpu.trace_start"() <{level = 10 : i32, message = "bqd,bkd->bqk"}> : () -> ()
    %cst_32 = arith.constant dense<0.000000e+00> : vector<2x8x8xf32>
    %88 = tpu.matmul %86, %87, %cst_32 {dimension_numbers = #tpu.dot_dimension_numbers<[2], [2], [1], [1], [0, 0, 0, 1, 1, 1], [0], [0]>} : vector<2x8x8xf32>, vector<2x8x8xf32>, vector<2x8x8xf32> -> vector<2x8x8xf32>
    "tpu.trace_stop"() : () -> ()
    %89 = vector.broadcast %3 : vector<1x8x8xf32> to vector<2x8x8xf32>
    %90 = arith.addf %88, %89 : vector<2x8x8xf32>
    %cst_33 = arith.constant dense<0xFF800000> : vector<2x8xf32>
    %91 = vector.multi_reduction <maximumf>, %90, %cst_33 [2] : vector<2x8x8xf32> to vector<2x8xf32>
    %92 = vector.shape_cast %91 : vector<2x8xf32> to vector<2x8x1xf32>
    %93 = vector.broadcast %92 : vector<2x8x1xf32> to vector<2x8x8xf32>
    %94 = arith.subf %90, %93 : vector<2x8x8xf32>
    %95 = math.exp %94 : vector<2x8x8xf32>
    %cst_34 = arith.constant dense<0.000000e+00> : vector<2x8xf32>
    %96 = vector.multi_reduction <add>, %95, %cst_34 [2] : vector<2x8x8xf32> to vector<2x8xf32>
    %97 = vector.shape_cast %96 : vector<2x8xf32> to vector<2x8x1xf32>
    %98 = tpu.reciprocal %97 : vector<2x8x1xf32> -> vector<2x8x1xf32>
    %99 = vector.broadcast %98 : vector<2x8x1xf32> to vector<2x8x8xf32>
    %100 = arith.mulf %95, %99 : vector<2x8x8xf32>
    %101 = vector.extract_strided_slice %21 {offsets = [0, 0, 24], sizes = [2, 8, 8], strides = [1, 1, 1]} : vector<2x8x32xf32> to vector<2x8x8xf32>
    "tpu.trace_start"() <{level = 10 : i32, message = "bqk,bkd->bqd"}> : () -> ()
    %cst_35 = arith.constant dense<0.000000e+00> : vector<2x8x8xf32>
    %102 = tpu.matmul %100, %101, %cst_35 {dimension_numbers = #tpu.dot_dimension_numbers<[2], [1], [1], [2], [0, 0, 0, 1, 1, 2], [0], [0]>} : vector<2x8x8xf32>, vector<2x8x8xf32>, vector<2x8x8xf32> -> vector<2x8x8xf32>
    "tpu.trace_stop"() : () -> ()
    %c120 = arith.constant 120 : index
    %c0_36 = arith.constant 0 : index
    %103 = vector.load %arg2[%c120, %c0_36] : memref<368x128xf32, #tpu.memory_space<vmem>>, vector<8x32xf32>
    %104 = vector.shape_cast %102 : vector<2x8x8xf32> to vector<16x8xf32>
    %cst_37 = arith.constant dense<0.000000e+00> : vector<16x32xf32>
    %105 = tpu.matmul %104, %103, %cst_37 {dimension_numbers = #tpu.dot_dimension_numbers<[1], [0], [0], [1], [0, 0, 1, 1], [], []>} : vector<16x8xf32>, vector<8x32xf32>, vector<16x32xf32> -> vector<16x32xf32>
    %106 = arith.addf %85, %105 : vector<16x32xf32>
    %c355 = arith.constant 355 : index
    %c0_38 = arith.constant 0 : index
    %107 = vector.load %arg2[%c355, %c0_38] : memref<368x128xf32, #tpu.memory_space<vmem>>, vector<1x32xf32>
    %108 = vector.broadcast %107 : vector<1x32xf32> to vector<16x32xf32>
    %109 = arith.addf %106, %108 : vector<16x32xf32>
    %110 = arith.addf %0, %109 : vector<16x32xf32>
    %c356 = arith.constant 356 : index
    %c0_39 = arith.constant 0 : index
    %111 = vector.load %arg2[%c356, %c0_39] : memref<368x128xf32, #tpu.memory_space<vmem>>, vector<1x32xf32>
    %c357 = arith.constant 357 : index
    %c0_40 = arith.constant 0 : index
    %112 = vector.load %arg2[%c357, %c0_40] : memref<368x128xf32, #tpu.memory_space<vmem>>, vector<1x32xf32>
    %cst_41 = arith.constant dense<0.000000e+00> : vector<16xf32>
    %113 = vector.multi_reduction <add>, %110, %cst_41 [1] : vector<16x32xf32> to vector<16xf32>
    %114 = vector.shape_cast %113 : vector<16xf32> to vector<16x1xf32>
    %cst_42 = arith.constant 3.200000e+01 : f32
    %115 = vector.broadcast %cst_42 : f32 to vector<16x1xf32>
    %116 = arith.divf %114, %115 : vector<16x1xf32>
    %117 = vector.broadcast %116 : vector<16x1xf32> to vector<16x32xf32>
    %118 = arith.subf %110, %117 : vector<16x32xf32>
    %119 = arith.mulf %118, %118 : vector<16x32xf32>
    %cst_43 = arith.constant dense<0.000000e+00> : vector<16xf32>
    %120 = vector.multi_reduction <add>, %119, %cst_43 [1] : vector<16x32xf32> to vector<16xf32>
    %121 = vector.shape_cast %120 : vector<16xf32> to vector<16x1xf32>
    %cst_44 = arith.constant 3.200000e+01 : f32
    %122 = vector.broadcast %cst_44 : f32 to vector<16x1xf32>
    %123 = arith.divf %121, %122 : vector<16x1xf32>
    %cst_45 = arith.constant 9.99999974E-6 : f32
    %124 = vector.broadcast %cst_45 : f32 to vector<16x1xf32>
    %125 = arith.addf %123, %124 : vector<16x1xf32>
    %126 = math.rsqrt %125 : vector<16x1xf32>
    %127 = vector.broadcast %116 : vector<16x1xf32> to vector<16x32xf32>
    %128 = arith.subf %110, %127 : vector<16x32xf32>
    %129 = vector.broadcast %126 : vector<16x1xf32> to vector<16x32xf32>
    %130 = arith.mulf %128, %129 : vector<16x32xf32>
    %131 = vector.broadcast %111 : vector<1x32xf32> to vector<16x32xf32>
    %132 = arith.mulf %131, %130 : vector<16x32xf32>
    %133 = vector.broadcast %112 : vector<1x32xf32> to vector<16x32xf32>
    %134 = arith.addf %132, %133 : vector<16x32xf32>
    %c128 = arith.constant 128 : index
    %c0_46 = arith.constant 0 : index
    %135 = vector.load %arg2[%c128, %c0_46] : memref<368x128xf32, #tpu.memory_space<vmem>>, vector<32x32xf32>
    %cst_47 = arith.constant dense<0.000000e+00> : vector<16x32xf32>
    %136 = tpu.matmul %134, %135, %cst_47 {dimension_numbers = #tpu.dot_dimension_numbers<[1], [0], [0], [1], [0, 0, 1, 1], [], []>} : vector<16x32xf32>, vector<32x32xf32>, vector<16x32xf32> -> vector<16x32xf32>
    %c358 = arith.constant 358 : index
    %c0_48 = arith.constant 0 : index
    %137 = vector.load %arg2[%c358, %c0_48] : memref<368x128xf32, #tpu.memory_space<vmem>>, vector<1x32xf32>
    %138 = vector.broadcast %137 : vector<1x32xf32> to vector<16x32xf32>
    %139 = arith.addf %136, %138 : vector<16x32xf32>
    %c160 = arith.constant 160 : index
    %c0_49 = arith.constant 0 : index
    %140 = vector.load %arg2[%c160, %c0_49] : memref<368x128xf32, #tpu.memory_space<vmem>>, vector<32x32xf32>
    %cst_50 = arith.constant dense<0.000000e+00> : vector<16x32xf32>
    %141 = tpu.matmul %1, %140, %cst_50 {dimension_numbers = #tpu.dot_dimension_numbers<[1], [0], [0], [1], [0, 0, 1, 1], [], []>} : vector<16x32xf32>, vector<32x32xf32>, vector<16x32xf32> -> vector<16x32xf32>
    %c359 = arith.constant 359 : index
    %c0_51 = arith.constant 0 : index
    %142 = vector.load %arg2[%c359, %c0_51] : memref<368x128xf32, #tpu.memory_space<vmem>>, vector<1x32xf32>
    %143 = vector.broadcast %142 : vector<1x32xf32> to vector<16x32xf32>
    %144 = arith.addf %141, %143 : vector<16x32xf32>
    %c192 = arith.constant 192 : index
    %c0_52 = arith.constant 0 : index
    %145 = vector.load %arg2[%c192, %c0_52] : memref<368x128xf32, #tpu.memory_space<vmem>>, vector<32x32xf32>
    %cst_53 = arith.constant dense<0.000000e+00> : vector<16x32xf32>
    %146 = tpu.matmul %1, %145, %cst_53 {dimension_numbers = #tpu.dot_dimension_numbers<[1], [0], [0], [1], [0, 0, 1, 1], [], []>} : vector<16x32xf32>, vector<32x32xf32>, vector<16x32xf32> -> vector<16x32xf32>
    %c360 = arith.constant 360 : index
    %c0_54 = arith.constant 0 : index
    %147 = vector.load %arg2[%c360, %c0_54] : memref<368x128xf32, #tpu.memory_space<vmem>>, vector<1x32xf32>
    %148 = vector.broadcast %147 : vector<1x32xf32> to vector<16x32xf32>
    %149 = arith.addf %146, %148 : vector<16x32xf32>
    %150 = vector.shape_cast %139 : vector<16x32xf32> to vector<2x8x32xf32>
    %151 = vector.shape_cast %144 : vector<16x32xf32> to vector<2x8x32xf32>
    %152 = vector.shape_cast %149 : vector<16x32xf32> to vector<2x8x32xf32>
    %cst_55 = arith.constant 0.000000e+00 : f32
    %153 = vector.broadcast %cst_55 : f32 to vector<16x32xf32>
    %154 = vector.extract_strided_slice %150 {offsets = [0, 0, 0], sizes = [2, 8, 8], strides = [1, 1, 1]} : vector<2x8x32xf32> to vector<2x8x8xf32>
    %155 = vector.extract_strided_slice %151 {offsets = [0, 0, 0], sizes = [2, 8, 8], strides = [1, 1, 1]} : vector<2x8x32xf32> to vector<2x8x8xf32>
    "tpu.trace_start"() <{level = 10 : i32, message = "bqd,bkd->bqk"}> : () -> ()
    %cst_56 = arith.constant dense<0.000000e+00> : vector<2x8x8xf32>
    %156 = tpu.matmul %154, %155, %cst_56 {dimension_numbers = #tpu.dot_dimension_numbers<[2], [2], [1], [1], [0, 0, 0, 1, 1, 1], [0], [0]>} : vector<2x8x8xf32>, vector<2x8x8xf32>, vector<2x8x8xf32> -> vector<2x8x8xf32>
    "tpu.trace_stop"() : () -> ()
    %cst_57 = arith.constant dense<0xFF800000> : vector<2x8xf32>
    %157 = vector.multi_reduction <maximumf>, %156, %cst_57 [2] : vector<2x8x8xf32> to vector<2x8xf32>
    %158 = vector.shape_cast %157 : vector<2x8xf32> to vector<2x8x1xf32>
    %159 = vector.broadcast %158 : vector<2x8x1xf32> to vector<2x8x8xf32>
    %160 = arith.subf %156, %159 : vector<2x8x8xf32>
    %161 = math.exp %160 : vector<2x8x8xf32>
    %cst_58 = arith.constant dense<0.000000e+00> : vector<2x8xf32>
    %162 = vector.multi_reduction <add>, %161, %cst_58 [2] : vector<2x8x8xf32> to vector<2x8xf32>
    %163 = vector.shape_cast %162 : vector<2x8xf32> to vector<2x8x1xf32>
    %164 = tpu.reciprocal %163 : vector<2x8x1xf32> -> vector<2x8x1xf32>
    %165 = vector.broadcast %164 : vector<2x8x1xf32> to vector<2x8x8xf32>
    %166 = arith.mulf %161, %165 : vector<2x8x8xf32>
    %167 = vector.extract_strided_slice %152 {offsets = [0, 0, 0], sizes = [2, 8, 8], strides = [1, 1, 1]} : vector<2x8x32xf32> to vector<2x8x8xf32>
    "tpu.trace_start"() <{level = 10 : i32, message = "bqk,bkd->bqd"}> : () -> ()
    %cst_59 = arith.constant dense<0.000000e+00> : vector<2x8x8xf32>
    %168 = tpu.matmul %166, %167, %cst_59 {dimension_numbers = #tpu.dot_dimension_numbers<[2], [1], [1], [2], [0, 0, 0, 1, 1, 2], [0], [0]>} : vector<2x8x8xf32>, vector<2x8x8xf32>, vector<2x8x8xf32> -> vector<2x8x8xf32>
    "tpu.trace_stop"() : () -> ()
    %c224 = arith.constant 224 : index
    %c0_60 = arith.constant 0 : index
    %169 = vector.load %arg2[%c224, %c0_60] : memref<368x128xf32, #tpu.memory_space<vmem>>, vector<8x32xf32>
    %170 = vector.shape_cast %168 : vector<2x8x8xf32> to vector<16x8xf32>
    %cst_61 = arith.constant dense<0.000000e+00> : vector<16x32xf32>
    %171 = tpu.matmul %170, %169, %cst_61 {dimension_numbers = #tpu.dot_dimension_numbers<[1], [0], [0], [1], [0, 0, 1, 1], [], []>} : vector<16x8xf32>, vector<8x32xf32>, vector<16x32xf32> -> vector<16x32xf32>
    %172 = arith.addf %153, %171 : vector<16x32xf32>
    %173 = vector.extract_strided_slice %150 {offsets = [0, 0, 8], sizes = [2, 8, 8], strides = [1, 1, 1]} : vector<2x8x32xf32> to vector<2x8x8xf32>
    %174 = vector.extract_strided_slice %151 {offsets = [0, 0, 8], sizes = [2, 8, 8], strides = [1, 1, 1]} : vector<2x8x32xf32> to vector<2x8x8xf32>
    "tpu.trace_start"() <{level = 10 : i32, message = "bqd,bkd->bqk"}> : () -> ()
    %cst_62 = arith.constant dense<0.000000e+00> : vector<2x8x8xf32>
    %175 = tpu.matmul %173, %174, %cst_62 {dimension_numbers = #tpu.dot_dimension_numbers<[2], [2], [1], [1], [0, 0, 0, 1, 1, 1], [0], [0]>} : vector<2x8x8xf32>, vector<2x8x8xf32>, vector<2x8x8xf32> -> vector<2x8x8xf32>
    "tpu.trace_stop"() : () -> ()
    %cst_63 = arith.constant dense<0xFF800000> : vector<2x8xf32>
    %176 = vector.multi_reduction <maximumf>, %175, %cst_63 [2] : vector<2x8x8xf32> to vector<2x8xf32>
    %177 = vector.shape_cast %176 : vector<2x8xf32> to vector<2x8x1xf32>
    %178 = vector.broadcast %177 : vector<2x8x1xf32> to vector<2x8x8xf32>
    %179 = arith.subf %175, %178 : vector<2x8x8xf32>
    %180 = math.exp %179 : vector<2x8x8xf32>
    %cst_64 = arith.constant dense<0.000000e+00> : vector<2x8xf32>
    %181 = vector.multi_reduction <add>, %180, %cst_64 [2] : vector<2x8x8xf32> to vector<2x8xf32>
    %182 = vector.shape_cast %181 : vector<2x8xf32> to vector<2x8x1xf32>
    %183 = tpu.reciprocal %182 : vector<2x8x1xf32> -> vector<2x8x1xf32>
    %184 = vector.broadcast %183 : vector<2x8x1xf32> to vector<2x8x8xf32>
    %185 = arith.mulf %180, %184 : vector<2x8x8xf32>
    %186 = vector.extract_strided_slice %152 {offsets = [0, 0, 8], sizes = [2, 8, 8], strides = [1, 1, 1]} : vector<2x8x32xf32> to vector<2x8x8xf32>
    "tpu.trace_start"() <{level = 10 : i32, message = "bqk,bkd->bqd"}> : () -> ()
    %cst_65 = arith.constant dense<0.000000e+00> : vector<2x8x8xf32>
    %187 = tpu.matmul %185, %186, %cst_65 {dimension_numbers = #tpu.dot_dimension_numbers<[2], [1], [1], [2], [0, 0, 0, 1, 1, 2], [0], [0]>} : vector<2x8x8xf32>, vector<2x8x8xf32>, vector<2x8x8xf32> -> vector<2x8x8xf32>
    "tpu.trace_stop"() : () -> ()
    %c232 = arith.constant 232 : index
    %c0_66 = arith.constant 0 : index
    %188 = vector.load %arg2[%c232, %c0_66] : memref<368x128xf32, #tpu.memory_space<vmem>>, vector<8x32xf32>
    %189 = vector.shape_cast %187 : vector<2x8x8xf32> to vector<16x8xf32>
    %cst_67 = arith.constant dense<0.000000e+00> : vector<16x32xf32>
    %190 = tpu.matmul %189, %188, %cst_67 {dimension_numbers = #tpu.dot_dimension_numbers<[1], [0], [0], [1], [0, 0, 1, 1], [], []>} : vector<16x8xf32>, vector<8x32xf32>, vector<16x32xf32> -> vector<16x32xf32>
    %191 = arith.addf %172, %190 : vector<16x32xf32>
    %192 = vector.extract_strided_slice %150 {offsets = [0, 0, 16], sizes = [2, 8, 8], strides = [1, 1, 1]} : vector<2x8x32xf32> to vector<2x8x8xf32>
    %193 = vector.extract_strided_slice %151 {offsets = [0, 0, 16], sizes = [2, 8, 8], strides = [1, 1, 1]} : vector<2x8x32xf32> to vector<2x8x8xf32>
    "tpu.trace_start"() <{level = 10 : i32, message = "bqd,bkd->bqk"}> : () -> ()
    %cst_68 = arith.constant dense<0.000000e+00> : vector<2x8x8xf32>
    %194 = tpu.matmul %192, %193, %cst_68 {dimension_numbers = #tpu.dot_dimension_numbers<[2], [2], [1], [1], [0, 0, 0, 1, 1, 1], [0], [0]>} : vector<2x8x8xf32>, vector<2x8x8xf32>, vector<2x8x8xf32> -> vector<2x8x8xf32>
    "tpu.trace_stop"() : () -> ()
    %cst_69 = arith.constant dense<0xFF800000> : vector<2x8xf32>
    %195 = vector.multi_reduction <maximumf>, %194, %cst_69 [2] : vector<2x8x8xf32> to vector<2x8xf32>
    %196 = vector.shape_cast %195 : vector<2x8xf32> to vector<2x8x1xf32>
    %197 = vector.broadcast %196 : vector<2x8x1xf32> to vector<2x8x8xf32>
    %198 = arith.subf %194, %197 : vector<2x8x8xf32>
    %199 = math.exp %198 : vector<2x8x8xf32>
    %cst_70 = arith.constant dense<0.000000e+00> : vector<2x8xf32>
    %200 = vector.multi_reduction <add>, %199, %cst_70 [2] : vector<2x8x8xf32> to vector<2x8xf32>
    %201 = vector.shape_cast %200 : vector<2x8xf32> to vector<2x8x1xf32>
    %202 = tpu.reciprocal %201 : vector<2x8x1xf32> -> vector<2x8x1xf32>
    %203 = vector.broadcast %202 : vector<2x8x1xf32> to vector<2x8x8xf32>
    %204 = arith.mulf %199, %203 : vector<2x8x8xf32>
    %205 = vector.extract_strided_slice %152 {offsets = [0, 0, 16], sizes = [2, 8, 8], strides = [1, 1, 1]} : vector<2x8x32xf32> to vector<2x8x8xf32>
    "tpu.trace_start"() <{level = 10 : i32, message = "bqk,bkd->bqd"}> : () -> ()
    %cst_71 = arith.constant dense<0.000000e+00> : vector<2x8x8xf32>
    %206 = tpu.matmul %204, %205, %cst_71 {dimension_numbers = #tpu.dot_dimension_numbers<[2], [1], [1], [2], [0, 0, 0, 1, 1, 2], [0], [0]>} : vector<2x8x8xf32>, vector<2x8x8xf32>, vector<2x8x8xf32> -> vector<2x8x8xf32>
    "tpu.trace_stop"() : () -> ()
    %c240 = arith.constant 240 : index
    %c0_72 = arith.constant 0 : index
    %207 = vector.load %arg2[%c240, %c0_72] : memref<368x128xf32, #tpu.memory_space<vmem>>, vector<8x32xf32>
    %208 = vector.shape_cast %206 : vector<2x8x8xf32> to vector<16x8xf32>
    %cst_73 = arith.constant dense<0.000000e+00> : vector<16x32xf32>
    %209 = tpu.matmul %208, %207, %cst_73 {dimension_numbers = #tpu.dot_dimension_numbers<[1], [0], [0], [1], [0, 0, 1, 1], [], []>} : vector<16x8xf32>, vector<8x32xf32>, vector<16x32xf32> -> vector<16x32xf32>
    %210 = arith.addf %191, %209 : vector<16x32xf32>
    %211 = vector.extract_strided_slice %150 {offsets = [0, 0, 24], sizes = [2, 8, 8], strides = [1, 1, 1]} : vector<2x8x32xf32> to vector<2x8x8xf32>
    %212 = vector.extract_strided_slice %151 {offsets = [0, 0, 24], sizes = [2, 8, 8], strides = [1, 1, 1]} : vector<2x8x32xf32> to vector<2x8x8xf32>
    "tpu.trace_start"() <{level = 10 : i32, message = "bqd,bkd->bqk"}> : () -> ()
    %cst_74 = arith.constant dense<0.000000e+00> : vector<2x8x8xf32>
    %213 = tpu.matmul %211, %212, %cst_74 {dimension_numbers = #tpu.dot_dimension_numbers<[2], [2], [1], [1], [0, 0, 0, 1, 1, 1], [0], [0]>} : vector<2x8x8xf32>, vector<2x8x8xf32>, vector<2x8x8xf32> -> vector<2x8x8xf32>
    "tpu.trace_stop"() : () -> ()
    %cst_75 = arith.constant dense<0xFF800000> : vector<2x8xf32>
    %214 = vector.multi_reduction <maximumf>, %213, %cst_75 [2] : vector<2x8x8xf32> to vector<2x8xf32>
    %215 = vector.shape_cast %214 : vector<2x8xf32> to vector<2x8x1xf32>
    %216 = vector.broadcast %215 : vector<2x8x1xf32> to vector<2x8x8xf32>
    %217 = arith.subf %213, %216 : vector<2x8x8xf32>
    %218 = math.exp %217 : vector<2x8x8xf32>
    %cst_76 = arith.constant dense<0.000000e+00> : vector<2x8xf32>
    %219 = vector.multi_reduction <add>, %218, %cst_76 [2] : vector<2x8x8xf32> to vector<2x8xf32>
    %220 = vector.shape_cast %219 : vector<2x8xf32> to vector<2x8x1xf32>
    %221 = tpu.reciprocal %220 : vector<2x8x1xf32> -> vector<2x8x1xf32>
    %222 = vector.broadcast %221 : vector<2x8x1xf32> to vector<2x8x8xf32>
    %223 = arith.mulf %218, %222 : vector<2x8x8xf32>
    %224 = vector.extract_strided_slice %152 {offsets = [0, 0, 24], sizes = [2, 8, 8], strides = [1, 1, 1]} : vector<2x8x32xf32> to vector<2x8x8xf32>
    "tpu.trace_start"() <{level = 10 : i32, message = "bqk,bkd->bqd"}> : () -> ()
    %cst_77 = arith.constant dense<0.000000e+00> : vector<2x8x8xf32>
    %225 = tpu.matmul %223, %224, %cst_77 {dimension_numbers = #tpu.dot_dimension_numbers<[2], [1], [1], [2], [0, 0, 0, 1, 1, 2], [0], [0]>} : vector<2x8x8xf32>, vector<2x8x8xf32>, vector<2x8x8xf32> -> vector<2x8x8xf32>
    "tpu.trace_stop"() : () -> ()
    %c248 = arith.constant 248 : index
    %c0_78 = arith.constant 0 : index
    %226 = vector.load %arg2[%c248, %c0_78] : memref<368x128xf32, #tpu.memory_space<vmem>>, vector<8x32xf32>
    %227 = vector.shape_cast %225 : vector<2x8x8xf32> to vector<16x8xf32>
    %cst_79 = arith.constant dense<0.000000e+00> : vector<16x32xf32>
    %228 = tpu.matmul %227, %226, %cst_79 {dimension_numbers = #tpu.dot_dimension_numbers<[1], [0], [0], [1], [0, 0, 1, 1], [], []>} : vector<16x8xf32>, vector<8x32xf32>, vector<16x32xf32> -> vector<16x32xf32>
    %229 = arith.addf %210, %228 : vector<16x32xf32>
    %c361 = arith.constant 361 : index
    %c0_80 = arith.constant 0 : index
    %230 = vector.load %arg2[%c361, %c0_80] : memref<368x128xf32, #tpu.memory_space<vmem>>, vector<1x32xf32>
    %231 = vector.broadcast %230 : vector<1x32xf32> to vector<16x32xf32>
    %232 = arith.addf %229, %231 : vector<16x32xf32>
    %233 = arith.addf %134, %232 : vector<16x32xf32>
    %c362 = arith.constant 362 : index
    %c0_81 = arith.constant 0 : index
    %234 = vector.load %arg2[%c362, %c0_81] : memref<368x128xf32, #tpu.memory_space<vmem>>, vector<1x32xf32>
    %c363 = arith.constant 363 : index
    %c0_82 = arith.constant 0 : index
    %235 = vector.load %arg2[%c363, %c0_82] : memref<368x128xf32, #tpu.memory_space<vmem>>, vector<1x32xf32>
    %cst_83 = arith.constant dense<0.000000e+00> : vector<16xf32>
    %236 = vector.multi_reduction <add>, %233, %cst_83 [1] : vector<16x32xf32> to vector<16xf32>
    %237 = vector.shape_cast %236 : vector<16xf32> to vector<16x1xf32>
    %cst_84 = arith.constant 3.200000e+01 : f32
    %238 = vector.broadcast %cst_84 : f32 to vector<16x1xf32>
    %239 = arith.divf %237, %238 : vector<16x1xf32>
    %240 = vector.broadcast %239 : vector<16x1xf32> to vector<16x32xf32>
    %241 = arith.subf %233, %240 : vector<16x32xf32>
    %242 = arith.mulf %241, %241 : vector<16x32xf32>
    %cst_85 = arith.constant dense<0.000000e+00> : vector<16xf32>
    %243 = vector.multi_reduction <add>, %242, %cst_85 [1] : vector<16x32xf32> to vector<16xf32>
    %244 = vector.shape_cast %243 : vector<16xf32> to vector<16x1xf32>
    %cst_86 = arith.constant 3.200000e+01 : f32
    %245 = vector.broadcast %cst_86 : f32 to vector<16x1xf32>
    %246 = arith.divf %244, %245 : vector<16x1xf32>
    %cst_87 = arith.constant 9.99999974E-6 : f32
    %247 = vector.broadcast %cst_87 : f32 to vector<16x1xf32>
    %248 = arith.addf %246, %247 : vector<16x1xf32>
    %249 = math.rsqrt %248 : vector<16x1xf32>
    %250 = vector.broadcast %239 : vector<16x1xf32> to vector<16x32xf32>
    %251 = arith.subf %233, %250 : vector<16x32xf32>
    %252 = vector.broadcast %249 : vector<16x1xf32> to vector<16x32xf32>
    %253 = arith.mulf %251, %252 : vector<16x32xf32>
    %254 = vector.broadcast %234 : vector<1x32xf32> to vector<16x32xf32>
    %255 = arith.mulf %254, %253 : vector<16x32xf32>
    %256 = vector.broadcast %235 : vector<1x32xf32> to vector<16x32xf32>
    %257 = arith.addf %255, %256 : vector<16x32xf32>
    %c256 = arith.constant 256 : index
    %c0_88 = arith.constant 0 : index
    %258 = vector.load %arg2[%c256, %c0_88] : memref<368x128xf32, #tpu.memory_space<vmem>>, vector<32x64xf32>
    %cst_89 = arith.constant dense<0.000000e+00> : vector<16x64xf32>
    %259 = tpu.matmul %257, %258, %cst_89 {dimension_numbers = #tpu.dot_dimension_numbers<[1], [0], [0], [1], [0, 0, 1, 1], [], []>} : vector<16x32xf32>, vector<32x64xf32>, vector<16x64xf32> -> vector<16x64xf32>
    %c364 = arith.constant 364 : index
    %c0_90 = arith.constant 0 : index
    %260 = vector.load %arg2[%c364, %c0_90] : memref<368x128xf32, #tpu.memory_space<vmem>>, vector<1x64xf32>
    %261 = vector.broadcast %260 : vector<1x64xf32> to vector<16x64xf32>
    %262 = arith.addf %259, %261 : vector<16x64xf32>
    %cst_91 = arith.constant 0.000000e+00 : f32
    %263 = vector.broadcast %cst_91 : f32 to vector<16x64xf32>
    %264 = arith.maximumf %262, %263 : vector<16x64xf32>
    %c288 = arith.constant 288 : index
    %c0_92 = arith.constant 0 : index
    %265 = vector.load %arg2[%c288, %c0_92] : memref<368x128xf32, #tpu.memory_space<vmem>>, vector<64x32xf32>
    %cst_93 = arith.constant dense<0.000000e+00> : vector<16x32xf32>
    %266 = tpu.matmul %264, %265, %cst_93 {dimension_numbers = #tpu.dot_dimension_numbers<[1], [0], [0], [1], [0, 0, 1, 1], [], []>} : vector<16x64xf32>, vector<64x32xf32>, vector<16x32xf32> -> vector<16x32xf32>
    %c365 = arith.constant 365 : index
    %c0_94 = arith.constant 0 : index
    %267 = vector.load %arg2[%c365, %c0_94] : memref<368x128xf32, #tpu.memory_space<vmem>>, vector<1x32xf32>
    %268 = vector.broadcast %267 : vector<1x32xf32> to vector<16x32xf32>
    %269 = arith.addf %266, %268 : vector<16x32xf32>
    %270 = arith.addf %257, %269 : vector<16x32xf32>
    %c366 = arith.constant 366 : index
    %c0_95 = arith.constant 0 : index
    %271 = vector.load %arg2[%c366, %c0_95] : memref<368x128xf32, #tpu.memory_space<vmem>>, vector<1x32xf32>
    %c367 = arith.constant 367 : index
    %c0_96 = arith.constant 0 : index
    %272 = vector.load %arg2[%c367, %c0_96] : memref<368x128xf32, #tpu.memory_space<vmem>>, vector<1x32xf32>
    %cst_97 = arith.constant dense<0.000000e+00> : vector<16xf32>
    %273 = vector.multi_reduction <add>, %270, %cst_97 [1] : vector<16x32xf32> to vector<16xf32>
    %274 = vector.shape_cast %273 : vector<16xf32> to vector<16x1xf32>
    %cst_98 = arith.constant 3.200000e+01 : f32
    %275 = vector.broadcast %cst_98 : f32 to vector<16x1xf32>
    %276 = arith.divf %274, %275 : vector<16x1xf32>
    %277 = vector.broadcast %276 : vector<16x1xf32> to vector<16x32xf32>
    %278 = arith.subf %270, %277 : vector<16x32xf32>
    %279 = arith.mulf %278, %278 : vector<16x32xf32>
    %cst_99 = arith.constant dense<0.000000e+00> : vector<16xf32>
    %280 = vector.multi_reduction <add>, %279, %cst_99 [1] : vector<16x32xf32> to vector<16xf32>
    %281 = vector.shape_cast %280 : vector<16xf32> to vector<16x1xf32>
    %cst_100 = arith.constant 3.200000e+01 : f32
    %282 = vector.broadcast %cst_100 : f32 to vector<16x1xf32>
    %283 = arith.divf %281, %282 : vector<16x1xf32>
    %cst_101 = arith.constant 9.99999974E-6 : f32
    %284 = vector.broadcast %cst_101 : f32 to vector<16x1xf32>
    %285 = arith.addf %283, %284 : vector<16x1xf32>
    %286 = math.rsqrt %285 : vector<16x1xf32>
    %287 = vector.broadcast %276 : vector<16x1xf32> to vector<16x32xf32>
    %288 = arith.subf %270, %287 : vector<16x32xf32>
    %289 = vector.broadcast %286 : vector<16x1xf32> to vector<16x32xf32>
    %290 = arith.mulf %288, %289 : vector<16x32xf32>
    %291 = vector.broadcast %271 : vector<1x32xf32> to vector<16x32xf32>
    %292 = arith.mulf %291, %290 : vector<16x32xf32>
    %293 = vector.broadcast %272 : vector<1x32xf32> to vector<16x32xf32>
    %294 = arith.addf %292, %293 : vector<16x32xf32>
    %c0_102 = arith.constant 0 : index
    %c0_103 = arith.constant 0 : index
    %295 = vector.load %arg3[%c0_102, %c0_103] : memref<16x32xf32, #tpu.memory_space<vmem>>, vector<16x32xf32>
    tpu.vector_store %arg3[%c0_102, %c0_103], %294 {strides = array<i32>} : memref<16x32xf32, #tpu.memory_space<vmem>>, vector<16x32xf32>,
    return
  }
}

</mosaic_0001>

<bundles_post_ra>
// kernel: tpu_custom_call.1
= control target key start
LH: loop header
LB: loop body
LE: loop exit
PB: predicated region body
PF: predicated region fallthrough
CT: control target
= control target key end

     0   :  { %8 = vsyncpa [#allocation3], 0  ;;  %s5358_s0 = inlined_call_operand.hbm [shape: f32[32,32], index: 0, kind: input, shape index: {}]   ;;  %s5359_s1 = inlined_call_operand.hbm [shape: f32[8,8], index: 1, kind: input, shape index: {}]   ;;  %s5360_s2 = inlined_call_operand.hbm [shape: f32[368,128], index: 2, kind: input, shape index: {}]   ;;  %s5361_s3 = inlined_call_operand.hbm [shape: f32[16,32], index: 3, kind: output, shape index: {}]  }
   0x1   :  { %9 = vsyncpa [#allocation6], 0 }
   0x2   :  { %10 = vsyncpa [#allocation4], 0  ;;  %s4924_s12 = smov [#allocation5]   ;;  %s4925_s14 = smov [#allocation2]  }
   0x3   :  { %s29_s13 = sshll.u32 %s4924_s12, 4  ;;  %s16_s15 = sshll.u32 %s4925_s14, 4  ;;  %s30_s13 = int_to_ptr.vmem [resolvable:$true] %s29_s13  ;;  %s17_s15 = int_to_ptr.vmem [resolvable:$true] %s16_s15 }
   0x4   :  { %s4846_s16 = scalar_lea.vmem %s30_s13, 128  ;;  %p4851_p1 = scmp.lt.s32.totalorder %s30_s13, %s30_s13 }
   0x5   :  { %p4847_p0 = scmp.ne.s32.totalorder %s30_s13, %s4846_s16  ;;  %p4852_p2 = scmp.lt.s32.totalorder %s4846_s16, %s4846_s16 }
   0x7   :  { %p4853_p3 = por %p4852_p2, %p4851_p1 }
   0x9   :  { %p4854_p4 = pnand %p4853_p3, %p4847_p0 }
   0xb   :  { %4857 = shalt.err (!%p4854_p4)
}
   0xc   :  { %32 = dma.hbm_to_vmem [thread:$0]  %s5359_s1, 128, %s30_s13, [#allocation6]  }
   0xd   :  { %s4866_s19 = scalar_lea.vmem %s17_s15, 512  ;;  %p4871_p6 = scmp.lt.s32.totalorder %s17_s15, %s17_s15 }
   0xe   :  { %p4867_p5 = scmp.ne.s32.totalorder %s17_s15, %s4866_s19  ;;  %p4872_p7 = scmp.lt.s32.totalorder %s4866_s19, %s4866_s19 }
  0x10   :  { %p4873_p8 = por %p4872_p7, %p4871_p6 }
  0x12   :  { %p4874_p9 = pnand %p4873_p8, %p4867_p5 }
  0x14   :  { %4877 = shalt.err (!%p4874_p9)
}
  0x15   :  { %s4926_s20 = smov 128   ;;  %s4927_s21 = smov 8  }
  0x16   :  { %22 = dma.hbm_to_vmem [thread:$0]  %s5358_s0, 512, %s17_s15, [#allocation3], %s4926_s20, %s4926_s20, %s4927_s21  }
  0x17   :  { %s4928_s24 = smov [#allocation7]  }
  0x18   :  { %s38_s25 = sshll.u32 %s4928_s24, 4  ;;  %s39_s25 = int_to_ptr.vmem [resolvable:$true] %s38_s25 }
  0x19   :  { %s4886_s1 = scalar_lea.vmem %s39_s25, 5888  ;;  %p4891_p11 = scmp.lt.s32.totalorder %s39_s25, %s39_s25 }
  0x1a   :  { %p4887_p10 = scmp.ne.s32.totalorder %s39_s25, %s4886_s1  ;;  %p4892_p12 = scmp.lt.s32.totalorder %s4886_s1, %s4886_s1 }
  0x1c   :  { %p4893_p13 = por %p4892_p12, %p4891_p11 }
  0x1e   :  { %p4894_p0 = pnand %p4893_p13, %p4887_p10 }
  0x20   :  { %4897 = shalt.err (!%p4894_p0)
}
  0x21   :  { %44 = dma.hbm_to_vmem [thread:$0]  %s5360_s2, 5888, %s39_s25, [#allocation6], %s4926_s20, %s4926_s20, %s4927_s21  }
  0x22   :  { %4918 = dma.done.wait [#allocation3], 512  }
  0x23   :  { %4919 = vsyncadd [#allocation3], 4294966784 }
  0x24   :  { %4920 = dma.done.wait [#allocation6], 6016  }
  0x25   :  { %4921 = vsyncadd [#allocation6], 4294961280  ;;  %v153_v0 = vld [vmem:[#allocation7 + $0x38] sm:$0xff]  ;;  %v152_v2 = vld [vmem:[#allocation7 + $0x30] sm:$0xff]  ;;  %vm68_vm0 = vcmask 261120   ;;  %v4929_v14 = vmov 0.0  }
  0x26   :  { %v62_v1 = vld [vmem:[#allocation7 + $0x18] sm:$0xff]  ;;  %4466 = vmatprep.subr.mxu1 %v153_v0  ;;  %v61_v3 = vld [vmem:[#allocation7 + $0x10] sm:$0xff]  ;;  %v151_v4 = vld [vmem:[#allocation7 + $0x28] sm:$0xff]  ;;  %vm4930_vm1 = vmmov 0   ;;  %vm318_vm2 = vcmask 64512   ;;  %s4931_s0 = smov 120  }
  0x27   :  { %4455 = vmatprep.subr.mxu0 %v62_v1  ;;  %4467 = vmatpush3.msra.mxu1 %v153_v0  ;;  %v60_v5 = vld [vmem:[#allocation7 + $0x8] sm:$0xff]  ;;  %v150_v6 = vld [vmem:[#allocation7 + $0x20] sm:$0xff]  ;;  %v4970_v7 = vld [vmem:[#allocation2] sm:$0xff]  ;;  %s4932_s2 = smov 112   ;;  %s4933_s28 = smov 104   ;;  %vm4075_vm3 = vcmask 523264  }
  0x28   :  { %4456 = vmatpush3.msra.mxu0 %v62_v1  ;;  %4468 = vmatprep.subr.mxu1 %v152_v2  ;;  %v59_v8 = vld [vmem:[#allocation7] sm:$0xff]  ;;  %v237_v10 = vld [vmem:[#allocation7 + $0x58] sm:$0xff]  ;;  %v236_v11 = vld [vmem:[#allocation7 + $0x50] sm:$0xff]  ;;  %s4934_s29 = smov [#allocation8]  }
  0x29   :  { %4457 = vmatprep.subr.mxu0 %v61_v3  ;;  %4469 = vmatpush3.msra.mxu1 %v152_v2  ;;  %v4972_v9 = vld [vmem:[#allocation2 + $0x8] sm:$0xff]  ;;  %v235_v12 = vld [vmem:[#allocation7 + $0x48] sm:$0xff]  ;;  %v5026_v31 = vld [vmem:[#allocation5] sm:$0xff]  ;;  %s4206_s30 = sshll.u32 %s4934_s29, 4  ;;  %s4207_s30 = int_to_ptr.vmem [resolvable:$true] %s4206_s30 }
  0x2a   :  { %4458 = vmatpush3.msra.mxu0 %v61_v3  ;;  %4470 = vmatprep.subr.mxu1 %v151_v4  ;;  %v234_v13 = vld [vmem:[#allocation7 + $0x40] sm:$0xff]  ;;  %s4898_s4 = scalar_lea.vmem %s4207_s30, 256  ;;  %p4903_p2 = scmp.lt.s32.totalorder %s4207_s30, %s4207_s30 }
  0x2b   :  { %4459 = vmatprep.subr.mxu0 %v60_v5  ;;  %4471 = vmatpush3.msra.mxu1 %v151_v4  ;;  %v4222_v15 = vld [vmem:[#allocation7 + $0x161] ss:$0 sm:$0xff]  ;;  %v4219_v17 = vld [vmem:[#allocation7 + $0x160] ss:$0 sm:$0xff]  ;;  %v4225_v25 = vld [vmem:[#allocation7 + $0x162] ss:$0 sm:$0xff]  ;;  %p4899_p1 = scmp.ne.s32.totalorder %s4207_s30, %s4898_s4  ;;  %p4904_p3 = scmp.lt.s32.totalorder %s4898_s4, %s4898_s4 }
  0x2c   :  { %4460 = vmatpush3.msra.mxu0 %v60_v5  ;;  %4472 = vmatprep.subr.mxu1 %v150_v6 }
  0x2d   :  { %4474 = vmatprep.mubr.msk.f32.mxu1 %vm68_vm0, %v4970_v7  ;;  %4473 = vmatpush3.msra.mxu1 %v150_v6  ;;  %p4905_p4 = por %p4904_p3, %p4903_p2 }
  0x2e   :  { %4461 = vmatprep.subr.mxu0 %v59_v8  ;;  %4475 = vmatmul.mubr.msk.f32.vlgmr.msra.gmra.mxu1 %vm68_vm0, %v4972_v9 }
  0x2f   :  { %4462 = vmatpush3.msra.mxu0 %v59_v8  ;;  %4463 = vmatprep.mubr.msk.f32.mxu0 %vm68_vm0, %v4970_v7  ;;  %p4906_p5 = pnand %p4905_p4, %p4899_p1 }
  0x30   :  { %4477 = vmatprep.subr.mxu0 %v237_v10  ;;  %4464 = vmatmul.mubr.msk.f32.vlgmr.msra.gmra.mxu0 %vm68_vm0, %v4972_v9 }
  0x31   :  { %4478 = vmatpush3.msra.mxu0 %v237_v10  ;;  %4485 = vmatprep.mubr.msk.f32.mxu0 %vm68_vm0, %v4970_v7 }
  0x32   :  { %4479 = vmatprep.subr.mxu0 %v236_v11  ;;  %4493 = vmatprep.subr.mxu1 %v4929_v14 }
  0x33   :  { %4480 = vmatpush3.msra.mxu0 %v236_v11  ;;  %4495 = vmatprep.mubr.msk.f32.mxu1 %vm4930_vm1, %v4929_v14 }
  0x34   :  { %4481 = vmatprep.subr.mxu0 %v235_v12 }
  0x35   :  { %4482 = vmatpush3.msra.mxu0 %v235_v12 }
  0x36   :  { %4483 = vmatprep.subr.mxu0 %v234_v13 }
  0x37   :  { %4484 = vmatpush3.msra.mxu0 %v234_v13 }
  0x38   :  { %4486 = vmatmul.mubr.msk.f32.vlgmr.msra.gmra.mxu0 %vm68_vm0, %v4972_v9  ;;  %4488 = vmatprep.subr.mxu0 %v4929_v14 }
  0x39   :  { %4490 = vmatprep.mubr.msk.f32.mxu0 %vm4930_vm1, %v4929_v14 }
  0xee   :  { %v4476_v16 = vpop.f32.mrf.mxu1 }
  0xef   :  { %v4992_v18 = vadd.f32 %v4476_v16, %v4222_v15 }
  0xf0   :  { %v4465_v19 = vpop.f32.mrf.mxu0  ;;  %v225_v20 = vpop.f32.mrf.mxu1 }
  0xf1   :  { %v4994_v21 = vadd.f32 %v4465_v19, %v4219_v17  ;;  %v4996_v22 = vadd.f32 %v4222_v15, %v225_v20  ;;  %720 = vrot.lane.b32.xlu1 %v4992_v18, %s4931_s0  ;;  %4494 = vmatpush3.xpose.msk.msra.mxu1 %vm318_vm2, %v4992_v18 }
  0xf2   :  { %v141_v23 = vpop.f32.mrf.mxu0  ;;  %4503 = vmatprep.subr.mxu1 %v4929_v14 }
  0xf3   :  { %v5003_v24 = vadd.f32 %v4219_v17, %v141_v23  ;;  %4489 = vmatpush3.xpose.msk.msra.mxu0 %vm318_vm2, %v4996_v22 }
  0xf4   :  { %4496 = vmatmul.mubr.msk.f32.vlgmr.msra.gmra.mxu1 %vm318_vm2, %v4994_v21  ;;  %4498 = vmatprep.subr.mxu0 %v4929_v14 }
  0xf5   :  { %640 = vrot.lane.b32.xlu1 %v5003_v24, %s4931_s0  ;;  %4505 = vmatprep.mubr.msk.f32.mxu1 %vm4930_vm1, %v4929_v14 }
  0xf6   :  { %4491 = vmatmul.mubr.msk.f32.vlgmr.msra.gmra.mxu0 %vm318_vm2, %v5003_v24 }
  0xf7   :  { %4500 = vmatprep.mubr.msk.f32.mxu0 %vm4930_vm1, %v4929_v14 }
  0xf8   :  { %v4487_v26 = vpop.f32.mrf.mxu0 }
  0xf9   :  { %v5018_v27 = vadd.f32 %v4487_v26, %v4225_v25 }
  0xfa   :  { %v309_v28 = vpop.f32.mrf.mxu0 }
  0xfb   :  { %v5020_v29 = vadd.f32 %v4225_v25, %v309_v28  ;;  %4504 = vmatpush3.msra.mxu1 %v5018_v27  ;;  %v639_v25 = vld [vmem:[#allocation7 + $0x60] sm:$0xff] }
  0xfc   :  { %4513 = vmatprep.subr.mxu1 %v4929_v14 }
  0xfd   :  { %4499 = vmatpush3.msra.mxu0 %v5020_v29 }
  0xfe   :  { %4508 = vmatprep.subr.mxu0 %v4929_v14 }
 0x163   :  { %v721_v49 = vpop.permute.xlu1 %720 }
 0x167   :  { %v641_v50 = vpop.permute.xlu1 %640 }
 0x1b4   :  { %v467_v30 = vpop.f32.mrf.mxu1 }
 0x1b5   :  { %v468_v36 = vadd.f32 %v467_v30, %v5026_v31 }
 0x1b6   :  { %v391_v32 = vpop.f32.mrf.mxu0  ;;  %v4497_v33 = vpop.f32.mrf.mxu1 }
 0x1b7   :  { %v392_v34 = vadd.f32 %v391_v32, %v5026_v31  ;;  %v474_v38 = vsel %vm318_vm2, %v468_v36, -inf }
 0x1b8   :  { %v4492_v35 = vpop.f32.mrf.mxu0 }
 0x1b9   :  { %v471_v37 = vsel %vm318_vm2, %v392_v34, -inf }
 0x1ba   :  { %472 = vmax.xlane.f32.xlu0 %v471_v37 }
 0x1be   :  { %475 = vmax.xlane.f32.xlu0 %v474_v38 }
 0x1d4   :  { %642 = vrot.lane.b32.xlu0 %v4996_v22, %s4931_s0 }
 0x243   :  { %v473_v39 = vpop.xlane.xlu0 %472 }
 0x244   :  { %v477_v40 = vsub.f32 %v392_v34, %v473_v39  ;;  %v972_v39 = vld [vmem:[#allocation7 + $0x68] sm:$0xff] }
 0x246   :  { %v479_v43 = vmul.f32 1.442695, %v477_v40 }
 0x247   :  { %v476_v41 = vpop.xlane.xlu0 %475 }
 0x248   :  { %v478_v42 = vsub.f32 %v468_v36, %v476_v41 }
 0x24a   :  { %v481_v44 = vmul.f32 1.442695, %v478_v42 }
 0x24b   :  { %v643_v58 = vpop.permute.xlu0 %642 }
 0x24c   :  { %4762 = vpow2.f32 %v481_v44 }
 0x24d   :  { %4764 = vpow2.f32 %v479_v43 }
 0x259   :  { %v4763_v45 = vpop.eup %4762 }
 0x25a   :  { %v486_v46 = vsel %vm318_vm2, %v4763_v45, 0.0  ;;  %v4765_v47 = vpop.eup %4764 }
 0x25b   :  { %487 = vadd.xlane.f32.xlu1 %v486_v46  ;;  %v483_v48 = vsel %vm318_vm2, %v4765_v47, 0.0 }
 0x25f   :  { %484 = vadd.xlane.f32.xlu1 %v483_v48 }
 0x270   :  { %718 = vrot.lane.b32.xlu1 %v4994_v21, %s4931_s0 }
 0x2e4   :  { %v488_v51 = vpop.xlane.xlu1 %487 }
 0x2e5   :  { %4766 = vrcp.f32 %v488_v51 }
 0x2e8   :  { %v485_v52 = vpop.xlane.xlu1 %484 }
 0x2e9   :  { %4768 = vrcp.f32 %v485_v52 }
 0x2ec   :  { %v719_v57 = vpop.permute.xlu1 %718 }
 0x2f2   :  { %v4767_v53 = vpop.eup %4766 }
 0x2f3   :  { %v492_v54 = vmul.f32 %v4767_v53, %v4763_v45 }
 0x2f5   :  { %4506 = vmatmul.mubr.msk.f32.vlgmr.msra.gmra.mxu1 %vm318_vm2, %v492_v54 }
 0x2f6   :  { %v4769_v55 = vpop.eup %4768  ;;  %4514 = vmatpush3.xpose.msk.msra.mxu1 %vm318_vm2, %v721_v49  ;;  %4515 = vmatprep.mubr.msk.f32.mxu1 %vm4930_vm1, %v4929_v14 }
 0x2f7   :  { %v491_v56 = vmul.f32 %v4769_v55, %v4765_v47  ;;  %4523 = vmatprep.subr.mxu1 %v4929_v14 }
 0x2f9   :  { %4501 = vmatmul.mubr.msk.f32.vlgmr.msra.gmra.mxu0 %vm318_vm2, %v491_v56  ;;  %4516 = vmatmul.mubr.msk.f32.vlgmr.msra.gmra.mxu1 %vm318_vm2, %v719_v57 }
 0x2fa   :  { %4509 = vmatpush3.xpose.msk.msra.mxu0 %vm318_vm2, %v643_v58  ;;  %4510 = vmatprep.mubr.msk.f32.mxu0 %vm4930_vm1, %v4929_v14 }
 0x2fb   :  { %4518 = vmatprep.subr.mxu0 %v4929_v14  ;;  %4525 = vmatprep.mubr.msk.f32.mxu1 %vm4930_vm1, %v4929_v14 }
 0x2fd   :  { %4511 = vmatmul.mubr.msk.f32.vlgmr.msra.gmra.mxu0 %vm318_vm2, %v641_v50 }
 0x2fe   :  { %4520 = vmatprep.mubr.msk.f32.mxu0 %vm4930_vm1, %v4929_v14 }
 0x3b5   :  { %v635_v59 = vpop.f32.mrf.mxu1 }
 0x3b7   :  { %v4507_v60 = vpop.f32.mrf.mxu1 }
 0x3b9   :  { %v562_v61 = vpop.f32.mrf.mxu0  ;;  %v792_v62 = vpop.f32.mrf.mxu1 }
 0x3ba   :  { %v793_v63 = vadd.f32 %v792_v62, %v5026_v31 }
 0x3bb   :  { %v4502_v0 = vpop.f32.mrf.mxu0  ;;  %v4517_v1 = vpop.f32.mrf.mxu1 }
 0x3bc   :  { %v799_v2 = vsel %vm318_vm2, %v793_v63, -inf }
 0x3bd   :  { %800 = vmax.xlane.f32.xlu1 %v799_v2  ;;  %v714_v3 = vpop.f32.mrf.mxu0 }
 0x3be   :  { %v715_v4 = vadd.f32 %v714_v3, %v5026_v31 }
 0x3bf   :  { %v4512_v5 = vpop.f32.mrf.mxu0 }
 0x3c0   :  { %v796_v6 = vsel %vm318_vm2, %v715_v4, -inf }
 0x3c1   :  { %797 = vmax.xlane.f32.xlu0 %v796_v6 }
 0x3ce   :  { %896 = vrot.lane.b32.xlu1 %v5018_v27, %s4931_s0 }
 0x3d2   :  { %1137 = vrot.lane.b32.xlu1 %v4996_v22, %s4932_s2 }
 0x3d6   :  { %1215 = vrot.lane.b32.xlu1 %v4992_v18, %s4932_s2 }
 0x3da   :  { %1213 = vrot.lane.b32.xlu1 %v4994_v21, %s4932_s2 }
 0x446   :  { %v801_v8 = vpop.xlane.xlu1 %800 }
 0x447   :  { %v803_v10 = vsub.f32 %v793_v63, %v801_v8 }
 0x449   :  { %v806_v11 = vmul.f32 1.442695, %v803_v10 }
 0x44a   :  { %v897_v12 = vpop.permute.xlu1 %896  ;;  %v798_v13 = vpop.xlane.xlu0 %797 }
 0x44b   :  { %4770 = vpow2.f32 %v806_v11  ;;  %v802_v15 = vsub.f32 %v715_v4, %v798_v13  ;;  %4524 = vmatpush3.msra.mxu1 %v897_v12 }
 0x44c   :  { %4533 = vmatprep.subr.mxu1 %v639_v25 }
 0x44d   :  { %v804_v16 = vmul.f32 1.442695, %v802_v15  ;;  %v1465_v15 = vld [vmem:[#allocation7 + $0x70] sm:$0xff] }
 0x44e   :  { %v1138_v32 = vpop.permute.xlu1 %1137 }
 0x44f   :  { %4772 = vpow2.f32 %v804_v16 }
 0x452   :  { %v1216_v36 = vpop.permute.xlu1 %1215 }
 0x456   :  { %v1214_v38 = vpop.permute.xlu1 %1213 }
 0x458   :  { %v4771_v17 = vpop.eup %4770 }
 0x459   :  { %v811_v19 = vsel %vm318_vm2, %v4771_v17, 0.0 }
 0x45a   :  { %812 = vadd.xlane.f32.xlu0 %v811_v19 }
 0x45c   :  { %v4773_v20 = vpop.eup %4772 }
 0x45d   :  { %v808_v23 = vsel %vm318_vm2, %v4773_v20, 0.0 }
 0x45e   :  { %809 = vadd.xlane.f32.xlu0 %v808_v23 }
 0x474   :  { %819 = vrot.lane.b32.xlu0 %v5020_v29, %s4931_s0 }
 0x478   :  { %1135 = vrot.lane.b32.xlu0 %v5003_v24, %s4932_s2 }
 0x4e3   :  { %v813_v26 = vpop.xlane.xlu0 %812 }
 0x4e4   :  { %4774 = vrcp.f32 %v813_v26 }
 0x4e7   :  { %v810_v28 = vpop.xlane.xlu0 %809 }
 0x4e8   :  { %4776 = vrcp.f32 %v810_v28 }
 0x4eb   :  { %v820_v30 = vpop.permute.xlu0 %819 }
 0x4ec   :  { %4519 = vmatpush3.msra.mxu0 %v820_v30 }
 0x4ed   :  { %4528 = vmatprep.subr.mxu0 %v972_v39 }
 0x4ef   :  { %v1136_v47 = vpop.permute.xlu0 %1135 }
 0x4f1   :  { %v4775_v33 = vpop.eup %4774 }
 0x4f2   :  { %v817_v34 = vmul.f32 %v4775_v33, %v4771_v17 }
 0x4f4   :  { %4526 = vmatmul.mubr.msk.f32.vlgmr.msra.gmra.mxu1 %vm318_vm2, %v817_v34 }
 0x4f5   :  { %v4777_v35 = vpop.eup %4776  ;;  %4535 = vmatprep.mubr.msk.f32.mxu1 %vm318_vm2, %v562_v61  ;;  %4534 = vmatpush3.msra.mxu1 %v639_v25 }
 0x4f6   :  { %4543 = vmatprep.subr.mxu1 %v4929_v14  ;;  %v816_v37 = vmul.f32 %v4777_v35, %v4773_v20 }
 0x4f8   :  { %4521 = vmatmul.mubr.msk.f32.vlgmr.msra.gmra.mxu0 %vm318_vm2, %v816_v37  ;;  %4536 = vmatmul.mubr.msk.f32.vlgmr.msra.gmra.mxu1 %vm318_vm2, %v635_v59 }
 0x4f9   :  { %4544 = vmatpush3.xpose.msk.msra.mxu1 %vm318_vm2, %v1216_v36  ;;  %4545 = vmatprep.mubr.msk.f32.mxu1 %vm4930_vm1, %v4929_v14 }
 0x4fa   :  { %4553 = vmatprep.subr.mxu1 %v4929_v14  ;;  %4529 = vmatpush3.msra.mxu0 %v972_v39 }
 0x4fb   :  { %4538 = vmatprep.subr.mxu0 %v4929_v14 }
 0x4fc   :  { %4546 = vmatmul.mubr.msk.f32.vlgmr.msra.gmra.mxu1 %vm318_vm2, %v1214_v38 }
 0x4fd   :  { %4555 = vmatprep.mubr.msk.f32.mxu1 %vm4930_vm1, %v4929_v14 }
 0x5b4   :  { %v968_v40 = vpop.f32.mrf.mxu1 }
 0x5b6   :  { %v4527_v41 = vpop.f32.mrf.mxu1 }
 0x5b8   :  { %v891_v42 = vpop.f32.mrf.mxu0  ;;  %v5085_v43 = vpop.f32.mrf.mxu1 }
 0x5b9   :  { %4530 = vmatprep.mubr.msk.f32.mxu0 %vm318_vm2, %v891_v42 }
 0x5ba   :  { %v4522_v44 = vpop.f32.mrf.mxu0  ;;  %4531 = vmatmul.mubr.msk.f32.vlgmr.msra.gmra.mxu0 %vm318_vm2, %v968_v40  ;;  %v5089_v45 = vpop.f32.mrf.mxu1 }
 0x5bb   :  { %4539 = vmatpush3.xpose.msk.msra.mxu0 %vm318_vm2, %v1138_v32  ;;  %4540 = vmatprep.mubr.msk.f32.mxu0 %vm4930_vm1, %v4929_v14 }
 0x5bc   :  { %v1287_v46 = vpop.f32.mrf.mxu1  ;;  %4548 = vmatprep.subr.mxu0 %v4929_v14 }
 0x5bd   :  { %v1288_v48 = vadd.f32 %v1287_v46, %v5026_v31 }
 0x5be   :  { %4541 = vmatmul.mubr.msk.f32.vlgmr.msra.gmra.mxu0 %vm318_vm2, %v1136_v47  ;;  %v4547_v49 = vpop.f32.mrf.mxu1 }
 0x5bf   :  { %v1294_v50 = vsel %vm318_vm2, %v1288_v48, -inf  ;;  %4550 = vmatprep.mubr.msk.f32.mxu0 %vm4930_vm1, %v4929_v14 }
 0x5c0   :  { %1295 = vmax.xlane.f32.xlu1 %v1294_v50 }
 0x5d1   :  { %1389 = vrot.lane.b32.xlu1 %v5018_v27, %s4932_s2 }
 0x5d5   :  { %1551 = vrot.lane.b32.xlu1 %v4996_v22, %s4933_s28 }
 0x5d9   :  { %1629 = vrot.lane.b32.xlu1 %v4992_v18, %s4933_s28 }
 0x5dd   :  { %1627 = vrot.lane.b32.xlu1 %v4994_v21, %s4933_s28 }
 0x649   :  { %v1296_v51 = vpop.xlane.xlu1 %1295 }
 0x64a   :  { %v1298_v53 = vsub.f32 %v1288_v48, %v1296_v51 }
 0x64c   :  { %v1301_v54 = vmul.f32 1.442695, %v1298_v53 }
 0x64d   :  { %v1390_v52 = vpop.permute.xlu1 %1389 }
 0x64e   :  { %4554 = vmatpush3.msra.mxu1 %v1390_v52  ;;  %4778 = vpow2.f32 %v1301_v54 }
 0x64f   :  { %4563 = vmatprep.subr.mxu1 %v4929_v14 }
 0x651   :  { %v1552_v4 = vpop.permute.xlu1 %1551 }
 0x655   :  { %v1630_v20 = vpop.permute.xlu1 %1629 }
 0x659   :  { %v1628_v26 = vpop.permute.xlu1 %1627 }
 0x65b   :  { %v4779_v59 = vpop.eup %4778 }
 0x65c   :  { %v1306_v21 = vsel %vm318_vm2, %v4779_v59, 0.0 }
 0x67a   :  { %v5109_v55 = vpop.f32.mrf.mxu0 }
 0x67b   :  { %v1132_v35 = vadd.f32 %v5085_v43, %v5109_v55 }
 0x67c   :  { %v5111_v56 = vpop.f32.mrf.mxu0 }
 0x67d   :  { %v1127_v37 = vadd.f32 %v5089_v45, %v5111_v56  ;;  %v1879_v56 = vld [vmem:[#allocation7 + $0x78] sm:$0xff] }
 0x67e   :  { %v1209_v57 = vpop.f32.mrf.mxu0 }
 0x67f   :  { %v1210_v22 = vadd.f32 %v1209_v57, %v5026_v31 }
 0x680   :  { %v4542_v58 = vpop.f32.mrf.mxu0 }
 0x681   :  { %v1291_v18 = vsel %vm318_vm2, %v1210_v22, -inf }
 0x682   :  { %1292 = vmax.xlane.f32.xlu0 %v1291_v18 }
 0x686   :  { %1307 = vadd.xlane.f32.xlu0 %v1306_v21 }
 0x70b   :  { %v1293_v60 = vpop.xlane.xlu0 %1292 }
 0x70c   :  { %v1297_v61 = vsub.f32 %v1210_v22, %v1293_v60 }
 0x70e   :  { %v1299_v62 = vmul.f32 1.442695, %v1297_v61 }
 0x70f   :  { %v1308_v63 = vpop.xlane.xlu0 %1307 }
 0x710   :  { %4780 = vpow2.f32 %v1299_v62 }
 0x711   :  { %4782 = vrcp.f32 %v1308_v63 }
 0x71d   :  { %v4781_v0 = vpop.eup %4780 }
 0x71e   :  { %v4783_v1 = vpop.eup %4782  ;;  %v1303_v2 = vsel %vm318_vm2, %v4781_v0, 0.0 }
 0x71f   :  { %1304 = vadd.xlane.f32.xlu0 %v1303_v2  ;;  %v1312_v3 = vmul.f32 %v4783_v1, %v4779_v59  ;;  %v4260_v59 = vld [vmem:[#allocation7 + $0x163] ss:$0 sm:$0xff] }
 0x721   :  { %4556 = vmatmul.mubr.msk.f32.vlgmr.msra.gmra.mxu1 %vm318_vm2, %v1312_v3 }
 0x722   :  { %4564 = vmatpush3.xpose.msk.msra.mxu1 %vm318_vm2, %v1552_v4  ;;  %4565 = vmatprep.mubr.msk.f32.mxu1 %vm4930_vm1, %v4929_v14 }
 0x723   :  { %4573 = vmatprep.subr.mxu1 %v4929_v14 }
 0x735   :  { %1313 = vrot.lane.b32.xlu0 %v5020_v29, %s4932_s2 }
 0x739   :  { %1549 = vrot.lane.b32.xlu0 %v5003_v24, %s4933_s28 }
 0x7a8   :  { %v1305_v5 = vpop.xlane.xlu0 %1304 }
 0x7a9   :  { %4784 = vrcp.f32 %v1305_v5 }
 0x7ac   :  { %v1314_v6 = vpop.permute.xlu0 %1313 }
 0x7ad   :  { %4549 = vmatpush3.msra.mxu0 %v1314_v6 }
 0x7ae   :  { %4558 = vmatprep.subr.mxu0 %v1465_v15 }
 0x7b0   :  { %v1550_v8 = vpop.permute.xlu0 %1549 }
 0x7b1   :  { %4566 = vmatmul.mubr.msk.f32.vlgmr.msra.gmra.mxu1 %vm318_vm2, %v1550_v8 }
 0x7b2   :  { %4575 = vmatprep.mubr.msk.f32.mxu1 %vm4930_vm1, %v4929_v14 }
 0x7b6   :  { %v4785_v10 = vpop.eup %4784 }
 0x7b7   :  { %v1311_v11 = vmul.f32 %v4785_v10, %v4781_v0 }
 0x7b9   :  { %4551 = vmatmul.mubr.msk.f32.vlgmr.msra.gmra.mxu0 %vm318_vm2, %v1311_v11 }
 0x7ba   :  { %4559 = vmatpush3.msra.mxu0 %v1465_v15 }
 0x7bb   :  { %4568 = vmatprep.subr.mxu0 %v4929_v14 }
 0x7e1   :  { %v1461_v12 = vpop.f32.mrf.mxu1 }
 0x7e3   :  { %v4557_v13 = vpop.f32.mrf.mxu1 }
 0x871   :  { %v1623_v24 = vpop.f32.mrf.mxu1 }
 0x872   :  { %v1624_v16 = vadd.f32 %v1623_v24, %v5026_v31  ;;  %v2106_v24 = vld [vmem:[#allocation7 + $0xb8] sm:$0xff] }
 0x873   :  { %v4567_v17 = vpop.f32.mrf.mxu1 }
 0x874   :  { %v1705_v19 = vsel %vm318_vm2, %v1624_v16, -inf  ;;  %v2015_v17 = vld [vmem:[#allocation7 + $0x90] sm:$0xff] }
 0x875   :  { %1706 = vmax.xlane.f32.xlu0 %v1705_v19  ;;  %v2104_v19 = vld [vmem:[#allocation7 + $0xa8] sm:$0xff] }
 0x879   :  { %v1385_v23 = vpop.f32.mrf.mxu0 }
 0x87a   :  { %4560 = vmatprep.mubr.msk.f32.mxu0 %vm318_vm2, %v1385_v23  ;;  %v2103_v23 = vld [vmem:[#allocation7 + $0xa0] sm:$0xff] }
 0x87b   :  { %v4552_v25 = vpop.f32.mrf.mxu0  ;;  %4561 = vmatmul.mubr.msk.f32.vlgmr.msra.gmra.mxu0 %vm318_vm2, %v1461_v12 }
 0x87c   :  { %4569 = vmatpush3.xpose.msk.msra.mxu0 %vm318_vm2, %v1630_v20  ;;  %4570 = vmatprep.mubr.msk.f32.mxu0 %vm4930_vm1, %v4929_v14  ;;  %v56_v20 = vld [vmem:[#allocation2 + $0x10] sm:$0xff] }
 0x87d   :  { %4578 = vmatprep.subr.mxu0 %v4929_v14  ;;  %v2014_v25 = vld [vmem:[#allocation7 + $0x88] sm:$0xff] }
 0x87f   :  { %4571 = vmatmul.mubr.msk.f32.vlgmr.msra.gmra.mxu0 %vm318_vm2, %v1628_v26  ;;  %v57_v26 = vld [vmem:[#allocation2 + $0x18] sm:$0xff] }
 0x880   :  { %4580 = vmatprep.mubr.msk.f32.mxu0 %vm4930_vm1, %v4929_v14 }
 0x8fe   :  { %v1707_v28 = vpop.xlane.xlu0 %1706 }
 0x8ff   :  { %v1711_v30 = vsub.f32 %v1624_v16, %v1707_v28  ;;  %v2016_v16 = vld [vmem:[#allocation7 + $0x98] sm:$0xff]  ;;  %v2013_v28 = vld [vmem:[#allocation7 + $0x80] sm:$0xff] }
 0x901   :  { %v1713_v32 = vmul.f32 1.442695, %v1711_v30 }
 0x903   :  { %4786 = vpow2.f32 %v1713_v32 }
 0x910   :  { %v4787_v33 = vpop.eup %4786 }
 0x911   :  { %v1717_v34 = vsel %vm318_vm2, %v4787_v33, 0.0 }
 0x912   :  { %1718 = vadd.xlane.f32.xlu0 %v1717_v34 }
 0x93b   :  { %v4562_v36 = vpop.f32.mrf.mxu0 }
 0x93c   :  { %v1548_v38 = vadd.f32 %v4562_v36, %v1132_v35 }
 0x93d   :  { %v1538_v39 = vpop.f32.mrf.mxu0 }
 0x93e   :  { %v1547_v40 = vadd.f32 %v1538_v39, %v1127_v37 }
 0x93f   :  { %v1701_v41 = vpop.f32.mrf.mxu0 }
 0x940   :  { %v1702_v42 = vadd.f32 %v1701_v41, %v5026_v31 }
 0x941   :  { %v4572_v44 = vpop.f32.mrf.mxu0 }
 0x942   :  { %v1708_v46 = vsel %vm318_vm2, %v1702_v42, -inf  ;;  %v4262_v44 = vld [vmem:[#allocation7 + $0x165] ss:$0 sm:$0xff] }
 0x943   :  { %1709 = vmax.xlane.f32.xlu1 %v1708_v46 }
 0x954   :  { %1803 = vrot.lane.b32.xlu1 %v5018_v27, %s4933_s28 }
 0x99b   :  { %v1719_v31 = vpop.xlane.xlu0 %1718 }
 0x9cc   :  { %v1710_v47 = vpop.xlane.xlu1 %1709 }
 0x9cd   :  { %v1712_v48 = vsub.f32 %v1702_v42, %v1710_v47 }
 0x9cf   :  { %v1715_v43 = vmul.f32 1.442695, %v1712_v48 }
 0x9d0   :  { %v1804_v49 = vpop.permute.xlu1 %1803 }
 0x9d1   :  { %4788 = vpow2.f32 %v1715_v43  ;;  %4579 = vmatpush3.msra.mxu0 %v1804_v49  ;;  %v4266_v43 = vld [vmem:[#allocation7 + $0x167] ss:$0 sm:$0xff] }
 0x9d2   :  { %4790 = vrcp.f32 %v1719_v31  ;;  %4588 = vmatprep.subr.mxu0 %v2016_v16 }
 0x9de   :  { %v4789_v45 = vpop.eup %4788 }
 0x9df   :  { %v1720_v50 = vsel %vm318_vm2, %v4789_v45, 0.0  ;;  %v4791_v52 = vpop.eup %4790 }
 0x9e0   :  { %1721 = vadd.xlane.f32.xlu0 %v1720_v50  ;;  %v1725_v27 = vmul.f32 %v4791_v52, %v4787_v33  ;;  %v4263_v52 = vld [vmem:[#allocation7 + $0x166] ss:$0 sm:$0xff] }
 0x9f6   :  { %1727 = vrot.lane.b32.xlu0 %v5020_v29, %s4933_s28 }
 0xa69   :  { %v1722_v51 = vpop.xlane.xlu0 %1721 }
 0xa6a   :  { %4792 = vrcp.f32 %v1722_v51 }
 0xa6d   :  { %v1728_v53 = vpop.permute.xlu0 %1727 }
 0xa6e   :  { %4574 = vmatpush3.msra.mxu1 %v1728_v53 }
 0xa6f   :  { %4576 = vmatmul.mubr.msk.f32.vlgmr.msra.gmra.mxu1 %vm318_vm2, %v1725_v27  ;;  %4583 = vmatprep.subr.mxu1 %v1879_v56 }
 0xa70   :  { %4584 = vmatpush3.msra.mxu1 %v1879_v56  ;;  %v2195_v56 = vld [vmem:[#allocation7 + $0xd0] sm:$0xff] }
 0xa71   :  { %4599 = vmatprep.subr.mxu1 %v2106_v24 }
 0xa77   :  { %v4793_v54 = vpop.eup %4792 }
 0xa78   :  { %v1726_v55 = vmul.f32 %v4793_v54, %v4789_v45 }
 0xa7a   :  { %4581 = vmatmul.mubr.msk.f32.vlgmr.msra.gmra.mxu0 %vm318_vm2, %v1726_v55  ;;  %v2196_v55 = vld [vmem:[#allocation7 + $0xd8] sm:$0xff] }
 0xa7b   :  { %4589 = vmatpush3.msra.mxu0 %v2016_v16 }
 0xa7c   :  { %4590 = vmatprep.subr.mxu0 %v2015_v17 }
 0xa7d   :  { %4591 = vmatpush3.msra.mxu0 %v2015_v17 }
 0xa7e   :  { %4592 = vmatprep.subr.mxu0 %v2014_v25 }
 0xa7f   :  { %4593 = vmatpush3.msra.mxu0 %v2014_v25 }
 0xa80   :  { %4594 = vmatprep.subr.mxu0 %v2013_v28 }
 0xa81   :  { %4595 = vmatpush3.msra.mxu0 %v2013_v28 }
 0xa82   :  { %4610 = vmatprep.subr.mxu0 %v2196_v55 }
 0xb2f   :  { %v1799_v57 = vpop.f32.mrf.mxu1 }
 0xb30   :  { %4585 = vmatprep.mubr.msk.f32.mxu1 %vm318_vm2, %v1799_v57  ;;  %v2194_v57 = vld [vmem:[#allocation7 + $0xc8] sm:$0xff] }
 0xb31   :  { %v4577_v29 = vpop.f32.mrf.mxu1 }
 0xb32   :  { %v2193_v29 = vld [vmem:[#allocation7 + $0xc0] sm:$0xff] }
 0xb3a   :  { %v1875_v22 = vpop.f32.mrf.mxu0 }
 0xb3b   :  { %4586 = vmatmul.mubr.msk.f32.vlgmr.msra.gmra.mxu1 %vm318_vm2, %v1875_v22 }
 0xb3c   :  { %v4582_v58 = vpop.f32.mrf.mxu0  ;;  %4600 = vmatpush3.msra.mxu1 %v2106_v24  ;;  %4607 = vmatprep.mubr.msk.f32.mxu1 %vm68_vm0, %v56_v20 }
 0xbfb   :  { %v4587_v18 = vpop.f32.mrf.mxu1 }
 0xbfc   :  { %v1962_v21 = vadd.f32 %v4587_v18, %v1548_v38  ;;  %v4261_v38 = vld [vmem:[#allocation7 + $0x164] ss:$0 sm:$0xff] }
 0xbfd   :  { %v1952_v60 = vpop.f32.mrf.mxu1 }
 0xbfe   :  { %v1969_v61 = vadd.f32 %v4260_v59, %v1962_v21  ;;  %v1961_v62 = vadd.f32 %v1952_v60, %v1547_v40 }
 0xc00   :  { %v1968_v63 = vadd.f32 %v4260_v59, %v1961_v62  ;;  %v1971_v0 = vadd.f32 %v1969_v61, %v4972_v9 }
 0xc02   :  { %v1977_v1 = vsel %vm68_vm0, %v1971_v0, 0.0  ;;  %v1970_v2 = vadd.f32 %v1968_v63, %v4970_v7  ;;  %v2105_v7 = vld [vmem:[#allocation7 + $0xb0] sm:$0xff] }
 0xc03   :  { %1978 = vadd.xlane.f32.xlu0 %v1977_v1  ;;  %4601 = vmatprep.subr.mxu1 %v2105_v7 }
 0xc04   :  { %v1974_v3 = vsel %vm68_vm0, %v1970_v2, 0.0  ;;  %4602 = vmatpush3.msra.mxu1 %v2105_v7 }
 0xc05   :  { %1975 = vadd.xlane.f32.xlu1 %v1974_v3  ;;  %4603 = vmatprep.subr.mxu1 %v2104_v19 }
 0xc06   :  { %4604 = vmatpush3.msra.mxu1 %v2104_v19 }
 0xc07   :  { %4605 = vmatprep.subr.mxu1 %v2103_v23 }
 0xc08   :  { %4606 = vmatpush3.msra.mxu1 %v2103_v23 }
 0xc09   :  { %4608 = vmatmul.mubr.msk.f32.vlgmr.msra.gmra.mxu1 %vm68_vm0, %v57_v26  ;;  %4621 = vmatprep.subr.mxu1 %v4929_v14 }
 0xc0a   :  { %4623 = vmatprep.mubr.msk.f32.mxu1 %vm4930_vm1, %v4929_v14 }
 0xc8c   :  { %v1979_v4 = vpop.xlane.xlu0 %1978 }
 0xc8d   :  { %v1982_v5 = vmul.f32 0.03125, %v1979_v4 }
 0xc8e   :  { %v1976_v6 = vpop.xlane.xlu1 %1975 }
 0xc8f   :  { %v1984_v8 = vsub.f32 %v1971_v0, %v1982_v5  ;;  %v1981_v10 = vmul.f32 0.03125, %v1976_v6 }
 0xc91   :  { %v1983_v11 = vsub.f32 %v1970_v2, %v1981_v10  ;;  %v1986_v12 = vmul.f32 %v1984_v8, %v1984_v8  ;;  %v4269_v10 = vld [vmem:[#allocation7 + $0x168] ss:$0 sm:$0xff] }
 0xc93   :  { %v1990_v13 = vsel %vm68_vm0, %v1986_v12, 0.0  ;;  %v1985_v15 = vmul.f32 %v1983_v11, %v1983_v11 }
 0xc94   :  { %1991 = vadd.xlane.f32.xlu1 %v1990_v13 }
 0xc95   :  { %v1987_v9 = vsel %vm68_vm0, %v1985_v15, 0.0 }
 0xc96   :  { %1988 = vadd.xlane.f32.xlu0 %v1987_v9 }
 0xcc9   :  { %v4609_v49 = vpop.f32.mrf.mxu1 }
 0xcca   :  { %v5178_v45 = vadd.f32 %v4609_v49, %v4266_v43 }
 0xccb   :  { %v2184_v50 = vpop.f32.mrf.mxu1 }
 0xccc   :  { %v5180_v31 = vadd.f32 %v4266_v43, %v2184_v50 }
 0xcce   :  { %4622 = vmatpush3.xpose.msk.msra.mxu1 %vm318_vm2, %v5180_v31 }
 0xccf   :  { %4626 = vmatprep.subr.mxu1 %v4929_v14 }
 0xd1d   :  { %v1992_v30 = vpop.xlane.xlu1 %1991 }
 0xd1e   :  { %v1994_v32 = vmul.f32 0.03125, %v1992_v30 }
 0xd1f   :  { %v1989_v33 = vpop.xlane.xlu0 %1988 }
 0xd20   :  { %v1996_v34 = vadd.f32 1e-05, %v1994_v32  ;;  %v1993_v35 = vmul.f32 0.03125, %v1989_v33 }
 0xd22   :  { %4794 = vrsqrt.f32 %v1996_v34  ;;  %v1995_v36 = vadd.f32 1e-05, %v1993_v35 }
 0xd24   :  { %4796 = vrsqrt.f32 %v1995_v36 }
 0xd2f   :  { %v4795_v37 = vpop.eup %4794 }
 0xd30   :  { %v2000_v39 = vmul.f32 %v4795_v37, %v1984_v8 }
 0xd31   :  { %v4797_v40 = vpop.eup %4796 }
 0xd32   :  { %v1999_v41 = vmul.f32 %v4797_v40, %v1983_v11  ;;  %v2006_v42 = vmul.f32 %v4261_v38, %v2000_v39 }
 0xd34   :  { %v2005_v46 = vmul.f32 %v4261_v38, %v1999_v41  ;;  %v5171_v48 = vadd.f32 %v4262_v44, %v2006_v42 }
 0xd36   :  { %v5169_v47 = vadd.f32 %v4262_v44, %v2005_v46 }
 0xd38   :  { %4596 = vmatprep.mubr.msk.f32.mxu0 %vm68_vm0, %v5169_v47 }
 0xd39   :  { %4597 = vmatmul.mubr.msk.f32.vlgmr.msra.gmra.mxu0 %vm68_vm0, %v5171_v48 }
 0xd3a   :  { %4618 = vmatprep.mubr.msk.f32.mxu0 %vm68_vm0, %v56_v20  ;;  %4611 = vmatpush3.msra.mxu0 %v2196_v55 }
 0xd3b   :  { %4612 = vmatprep.subr.mxu0 %v2195_v56 }
 0xd3c   :  { %4613 = vmatpush3.msra.mxu0 %v2195_v56 }
 0xd3d   :  { %4614 = vmatprep.subr.mxu0 %v2194_v57 }
 0xd3e   :  { %4615 = vmatpush3.msra.mxu0 %v2194_v57 }
 0xd3f   :  { %4616 = vmatprep.subr.mxu0 %v2193_v29 }
 0xd40   :  { %4617 = vmatpush3.msra.mxu0 %v2193_v29 }
 0xd41   :  { %4619 = vmatmul.mubr.msk.f32.vlgmr.msra.gmra.mxu0 %vm68_vm0, %v57_v26  ;;  %4631 = vmatprep.subr.mxu0 %v4929_v14 }
 0xd42   :  { %4633 = vmatprep.mubr.msk.f32.mxu0 %vm4930_vm1, %v4929_v14 }
 0xdf9   :  { %v4598_v51 = vpop.f32.mrf.mxu0 }
 0xdfa   :  { %v5193_v54 = vadd.f32 %v4598_v51, %v4263_v52 }
 0xdfb   :  { %v2094_v53 = vpop.f32.mrf.mxu0 }
 0xdfc   :  { %v5185_v27 = vadd.f32 %v4263_v52, %v2094_v53  ;;  %v2597_v53 = vld [vmem:[#allocation7 + $0xe0] sm:$0xff] }
 0xdfe   :  { %4624 = vmatmul.mubr.msk.f32.vlgmr.msra.gmra.mxu1 %vm318_vm2, %v5185_v27 }
 0xdff   :  { %4627 = vmatpush3.xpose.msk.msra.mxu1 %vm318_vm2, %v5178_v45  ;;  %4628 = vmatprep.mubr.msk.f32.mxu1 %vm4930_vm1, %v4929_v14 }
 0xe00   :  { %4636 = vmatprep.subr.mxu1 %v4929_v14 }
 0xe01   :  { %v4620_v8 = vpop.f32.mrf.mxu0 }
 0xe02   :  { %4629 = vmatmul.mubr.msk.f32.vlgmr.msra.gmra.mxu1 %vm318_vm2, %v5193_v54  ;;  %v5212_v11 = vadd.f32 %v4620_v8, %v4269_v10 }
 0xe03   :  { %4638 = vmatprep.mubr.msk.f32.mxu1 %vm4930_vm1, %v4929_v14  ;;  %v2268_v12 = vpop.f32.mrf.mxu0 }
 0xe04   :  { %4637 = vmatpush3.msra.mxu1 %v5212_v11  ;;  %v5215_v13 = vadd.f32 %v4269_v10, %v2268_v12 }
 0xe05   :  { %4646 = vmatprep.subr.mxu1 %v4929_v14 }
 0xe06   :  { %4632 = vmatpush3.msra.mxu0 %v5215_v13 }
 0xe07   :  { %4641 = vmatprep.subr.mxu0 %v4929_v14 }
 0xebe   :  { %v2349_v22 = vpop.f32.mrf.mxu1 }
 0xebf   :  { %v2429_v58 = vsel %vm318_vm2, %v2349_v22, -inf }
 0xec0   :  { %2430 = vmax.xlane.f32.xlu0 %v2429_v58  ;;  %v4625_v18 = vpop.f32.mrf.mxu1 }
 0xec2   :  { %v2425_v59 = vpop.f32.mrf.mxu1 }
 0xec3   :  { %v2432_v21 = vsel %vm318_vm2, %v2425_v59, -inf }
 0xec4   :  { %2433 = vmax.xlane.f32.xlu1 %v2432_v21  ;;  %v4630_v60 = vpop.f32.mrf.mxu1 }
 0xed5   :  { %2678 = vrot.lane.b32.xlu1 %v5178_v45, %s4931_s0 }
 0xed9   :  { %2598 = vrot.lane.b32.xlu1 %v5185_v27, %s4931_s0 }
 0xf49   :  { %v2431_v61 = vpop.xlane.xlu0 %2430 }
 0xf4a   :  { %v2435_v62 = vsub.f32 %v2349_v22, %v2431_v61  ;;  %v2930_v61 = vld [vmem:[#allocation7 + $0xe8] sm:$0xff] }
 0xf4c   :  { %v2437_v63 = vmul.f32 1.442695, %v2435_v62 }
 0xf4d   :  { %v2434_v0 = vpop.xlane.xlu1 %2433 }
 0xf4e   :  { %4798 = vpow2.f32 %v2437_v63  ;;  %v2436_v1 = vsub.f32 %v2425_v59, %v2434_v0 }
 0xf50   :  { %v2439_v2 = vmul.f32 1.442695, %v2436_v1 }
 0xf51   :  { %v2679_v15 = vpop.permute.xlu1 %2678 }
 0xf52   :  { %4800 = vpow2.f32 %v2439_v2 }
 0xf55   :  { %v2599_v9 = vpop.permute.xlu1 %2598 }
 0xf5b   :  { %v4799_v3 = vpop.eup %4798 }
 0xf5c   :  { %v2441_v4 = vsel %vm318_vm2, %v4799_v3, 0.0 }
 0xf5d   :  { %2442 = vadd.xlane.f32.xlu0 %v2441_v4 }
 0xf5f   :  { %v4801_v5 = vpop.eup %4800 }
 0xf60   :  { %v2444_v6 = vsel %vm318_vm2, %v4801_v5, 0.0 }
 0xf61   :  { %2445 = vadd.xlane.f32.xlu1 %v2444_v6 }
 0xf72   :  { %2676 = vrot.lane.b32.xlu1 %v5193_v54, %s4931_s0 }
 0xf73   :  { %2600 = vrot.lane.b32.xlu0 %v5180_v31, %s4931_s0 }
 0xfe6   :  { %v2443_v24 = vpop.xlane.xlu0 %2442 }
 0xfe7   :  { %4802 = vrcp.f32 %v2443_v24 }
 0xfea   :  { %v2446_v7 = vpop.xlane.xlu1 %2445  ;;  %v2601_v19 = vpop.permute.xlu0 %2600 }
 0xfeb   :  { %4804 = vrcp.f32 %v2446_v7 }
 0xfee   :  { %v2677_v25 = vpop.permute.xlu1 %2676 }
 0xff4   :  { %v4803_v16 = vpop.eup %4802 }
 0xff5   :  { %v2449_v17 = vmul.f32 %v4803_v16, %v4799_v3 }
 0xff7   :  { %4634 = vmatmul.mubr.msk.f32.vlgmr.msra.gmra.mxu0 %vm318_vm2, %v2449_v17 }
 0xff8   :  { %v4805_v20 = vpop.eup %4804  ;;  %4642 = vmatpush3.xpose.msk.msra.mxu0 %vm318_vm2, %v2601_v19  ;;  %4643 = vmatprep.mubr.msk.f32.mxu0 %vm4930_vm1, %v4929_v14 }
 0xff9   :  { %v2450_v23 = vmul.f32 %v4805_v20, %v4801_v5  ;;  %4651 = vmatprep.subr.mxu0 %v4929_v14 }
 0xffb   :  { %4639 = vmatmul.mubr.msk.f32.vlgmr.msra.gmra.mxu1 %vm318_vm2, %v2450_v23  ;;  %4644 = vmatmul.mubr.msk.f32.vlgmr.msra.gmra.mxu0 %vm318_vm2, %v2599_v9 }
 0xffc   :  { %4647 = vmatpush3.xpose.msk.msra.mxu1 %vm318_vm2, %v2679_v15  ;;  %4648 = vmatprep.mubr.msk.f32.mxu1 %vm4930_vm1, %v4929_v14 }
 0xffd   :  { %4656 = vmatprep.subr.mxu1 %v4929_v14  ;;  %4653 = vmatprep.mubr.msk.f32.mxu0 %vm4930_vm1, %v4929_v14 }
 0xfff   :  { %4649 = vmatmul.mubr.msk.f32.vlgmr.msra.gmra.mxu1 %vm318_vm2, %v2677_v25 }
0x1000   :  { %4658 = vmatprep.mubr.msk.f32.mxu1 %vm4930_vm1, %v4929_v14 }
0x10b7   :  { %v2520_v26 = vpop.f32.mrf.mxu0 }
0x10b9   :  { %v4635_v28 = vpop.f32.mrf.mxu0 }
0x10bb   :  { %v2593_v30 = vpop.f32.mrf.mxu1  ;;  %v2672_v32 = vpop.f32.mrf.mxu0 }
0x10bc   :  { %v2754_v33 = vsel %vm318_vm2, %v2672_v32, -inf }
0x10bd   :  { %2755 = vmax.xlane.f32.xlu0 %v2754_v33  ;;  %v4640_v34 = vpop.f32.mrf.mxu1  ;;  %v4645_v35 = vpop.f32.mrf.mxu0 }
0x10bf   :  { %v2750_v36 = vpop.f32.mrf.mxu1 }
0x10c0   :  { %v2757_v37 = vsel %vm318_vm2, %v2750_v36, -inf }
0x10c1   :  { %2758 = vmax.xlane.f32.xlu1 %v2757_v37  ;;  %v4650_v38 = vpop.f32.mrf.mxu1 }
0x10d2   :  { %2854 = vrot.lane.b32.xlu1 %v5212_v11, %s4931_s0 }
0x10d6   :  { %3095 = vrot.lane.b32.xlu1 %v5180_v31, %s4932_s2 }
0x10da   :  { %3173 = vrot.lane.b32.xlu1 %v5178_v45, %s4932_s2 }
0x10de   :  { %3171 = vrot.lane.b32.xlu1 %v5193_v54, %s4932_s2 }
0x1146   :  { %v2756_v39 = vpop.xlane.xlu0 %2755 }
0x1147   :  { %v2760_v40 = vsub.f32 %v2672_v32, %v2756_v39 }
0x1149   :  { %v2762_v41 = vmul.f32 1.442695, %v2760_v40 }
0x114a   :  { %v2759_v42 = vpop.xlane.xlu1 %2758 }
0x114b   :  { %4806 = vpow2.f32 %v2762_v41  ;;  %v2761_v44 = vsub.f32 %v2750_v36, %v2759_v42  ;;  %v3423_v41 = vld [vmem:[#allocation7 + $0xf0] sm:$0xff] }
0x114d   :  { %v2764_v46 = vmul.f32 1.442695, %v2761_v44 }
0x114e   :  { %v2855_v43 = vpop.permute.xlu1 %2854 }
0x114f   :  { %4808 = vpow2.f32 %v2764_v46  ;;  %4657 = vmatpush3.msra.mxu1 %v2855_v43 }
0x1150   :  { %4666 = vmatprep.subr.mxu1 %v2597_v53 }
0x1152   :  { %v3096_v58 = vpop.permute.xlu1 %3095 }
0x1156   :  { %v3174_v21 = vpop.permute.xlu1 %3173 }
0x1158   :  { %v4807_v49 = vpop.eup %4806 }
0x1159   :  { %v2766_v50 = vsel %vm318_vm2, %v4807_v49, 0.0 }
0x115a   :  { %2767 = vadd.xlane.f32.xlu0 %v2766_v50  ;;  %v3172_v60 = vpop.permute.xlu1 %3171 }
0x115c   :  { %v4809_v51 = vpop.eup %4808 }
0x115d   :  { %v2769_v52 = vsel %vm318_vm2, %v4809_v51, 0.0 }
0x115e   :  { %2770 = vadd.xlane.f32.xlu0 %v2769_v52 }
0x1174   :  { %2777 = vrot.lane.b32.xlu0 %v5215_v13, %s4931_s0 }
0x1178   :  { %3093 = vrot.lane.b32.xlu0 %v5185_v27, %s4932_s2 }
0x11e3   :  { %v2768_v55 = vpop.xlane.xlu0 %2767 }
0x11e4   :  { %4810 = vrcp.f32 %v2768_v55 }
0x11e7   :  { %v2771_v56 = vpop.xlane.xlu0 %2770 }
0x11e8   :  { %4812 = vrcp.f32 %v2771_v56 }
0x11eb   :  { %v2778_v57 = vpop.permute.xlu0 %2777 }
0x11ec   :  { %4652 = vmatpush3.msra.mxu0 %v2778_v57 }
0x11ed   :  { %4661 = vmatprep.subr.mxu0 %v2930_v61 }
0x11ef   :  { %v3094_v2 = vpop.permute.xlu0 %3093 }
0x11f1   :  { %v4811_v29 = vpop.eup %4810 }
0x11f2   :  { %v2774_v22 = vmul.f32 %v4811_v29, %v4807_v49 }
0x11f4   :  { %4654 = vmatmul.mubr.msk.f32.vlgmr.msra.gmra.mxu0 %vm318_vm2, %v2774_v22 }
0x11f5   :  { %v4813_v18 = vpop.eup %4812  ;;  %4662 = vmatpush3.msra.mxu0 %v2930_v61 }
0x11f6   :  { %v2775_v59 = vmul.f32 %v4813_v18, %v4809_v51  ;;  %4671 = vmatprep.subr.mxu0 %v4929_v14 }
0x11f8   :  { %4659 = vmatmul.mubr.msk.f32.vlgmr.msra.gmra.mxu1 %vm318_vm2, %v2775_v59 }
0x11f9   :  { %4668 = vmatprep.mubr.msk.f32.mxu1 %vm318_vm2, %v2520_v26  ;;  %4667 = vmatpush3.msra.mxu1 %v2597_v53 }
0x11fa   :  { %4676 = vmatprep.subr.mxu1 %v4929_v14 }
0x11fc   :  { %4669 = vmatmul.mubr.msk.f32.vlgmr.msra.gmra.mxu1 %vm318_vm2, %v2593_v30 }
0x11fd   :  { %4677 = vmatpush3.xpose.msk.msra.mxu1 %vm318_vm2, %v3174_v21  ;;  %4678 = vmatprep.mubr.msk.f32.mxu1 %vm4930_vm1, %v4929_v14 }
0x11fe   :  { %4686 = vmatprep.subr.mxu1 %v4929_v14 }
0x1200   :  { %4679 = vmatmul.mubr.msk.f32.vlgmr.msra.gmra.mxu1 %vm318_vm2, %v3172_v60 }
0x1201   :  { %4688 = vmatprep.mubr.msk.f32.mxu1 %vm4930_vm1, %v4929_v14 }
0x12b4   :  { %v2849_v62 = vpop.f32.mrf.mxu0 }
0x12b5   :  { %4663 = vmatprep.mubr.msk.f32.mxu0 %vm318_vm2, %v2849_v62 }
0x12b6   :  { %v4655_v63 = vpop.f32.mrf.mxu0 }
0x12b8   :  { %v2926_v0 = vpop.f32.mrf.mxu1 }
0x12b9   :  { %4664 = vmatmul.mubr.msk.f32.vlgmr.msra.gmra.mxu0 %vm318_vm2, %v2926_v0 }
0x12ba   :  { %4672 = vmatpush3.xpose.msk.msra.mxu0 %vm318_vm2, %v3096_v58  ;;  %v4660_v1 = vpop.f32.mrf.mxu1  ;;  %4673 = vmatprep.mubr.msk.f32.mxu0 %vm4930_vm1, %v4929_v14 }
0x12bb   :  { %4681 = vmatprep.subr.mxu0 %v4929_v14 }
0x12bc   :  { %v5275_v3 = vpop.f32.mrf.mxu1 }
0x12bd   :  { %4674 = vmatmul.mubr.msk.f32.vlgmr.msra.gmra.mxu0 %vm318_vm2, %v3094_v2 }
0x12be   :  { %v5278_v4 = vpop.f32.mrf.mxu1  ;;  %4683 = vmatprep.mubr.msk.f32.mxu0 %vm4930_vm1, %v4929_v14 }
0x12c0   :  { %v3245_v5 = vpop.f32.mrf.mxu1 }
0x12c1   :  { %v3252_v6 = vsel %vm318_vm2, %v3245_v5, -inf }
0x12c2   :  { %3253 = vmax.xlane.f32.xlu1 %v3252_v6  ;;  %v4680_v8 = vpop.f32.mrf.mxu1 }
0x12d3   :  { %3347 = vrot.lane.b32.xlu1 %v5212_v11, %s4932_s2 }
0x12d7   :  { %3509 = vrot.lane.b32.xlu1 %v5180_v31, %s4933_s28 }
0x12db   :  { %3587 = vrot.lane.b32.xlu1 %v5178_v45, %s4933_s28 }
0x12df   :  { %3585 = vrot.lane.b32.xlu1 %v5193_v54, %s4933_s28 }
0x134b   :  { %v3254_v10 = vpop.xlane.xlu1 %3253 }
0x134c   :  { %v3256_v15 = vsub.f32 %v3245_v5, %v3254_v10 }
0x134e   :  { %v3259_v9 = vmul.f32 1.442695, %v3256_v15 }
0x134f   :  { %v3348_v12 = vpop.permute.xlu1 %3347 }
0x1350   :  { %4687 = vmatpush3.msra.mxu1 %v3348_v12  ;;  %4814 = vpow2.f32 %v3259_v9  ;;  %v3837_v12 = vld [vmem:[#allocation7 + $0xf8] sm:$0xff] }
0x1351   :  { %4696 = vmatprep.subr.mxu1 %v4929_v14 }
0x1353   :  { %v3510_v33 = vpop.permute.xlu1 %3509 }
0x1357   :  { %v3588_v46 = vpop.permute.xlu1 %3587 }
0x135b   :  { %v3586_v50 = vpop.permute.xlu1 %3585 }
0x135d   :  { %v4815_v17 = vpop.eup %4814 }
0x135e   :  { %v3264_v54 = vsel %vm318_vm2, %v4815_v17, 0.0 }
0x1379   :  { %v5292_v24 = vpop.f32.mrf.mxu0 }
0x137a   :  { %v3090_v57 = vadd.f32 %v5275_v3, %v5292_v24 }
0x137b   :  { %v5294_v7 = vpop.f32.mrf.mxu0 }
0x137c   :  { %v3085_v22 = vadd.f32 %v5278_v4, %v5294_v7 }
0x137d   :  { %v3167_v16 = vpop.f32.mrf.mxu0 }
0x137e   :  { %v3249_v31 = vsel %vm318_vm2, %v3167_v16, -inf }
0x137f   :  { %3250 = vmax.xlane.f32.xlu0 %v3249_v31  ;;  %v4675_v45 = vpop.f32.mrf.mxu0 }
0x1383   :  { %3265 = vadd.xlane.f32.xlu0 %v3264_v54 }
0x1408   :  { %v3251_v19 = vpop.xlane.xlu0 %3250 }
0x1409   :  { %v3255_v20 = vsub.f32 %v3167_v16, %v3251_v19  ;;  %v4304_v16 = vld [vmem:[#allocation7 + $0x169] ss:$0 sm:$0xff] }
0x140b   :  { %v3257_v23 = vmul.f32 1.442695, %v3255_v20 }
0x140c   :  { %v3266_v25 = vpop.xlane.xlu0 %3265 }
0x140d   :  { %4816 = vpow2.f32 %v3257_v23 }
0x140e   :  { %4818 = vrcp.f32 %v3266_v25 }
0x141a   :  { %v4817_v26 = vpop.eup %4816 }
0x141b   :  { %v4819_v28 = vpop.eup %4818  ;;  %v3261_v30 = vsel %vm318_vm2, %v4817_v26, 0.0 }
0x141c   :  { %3262 = vadd.xlane.f32.xlu0 %v3261_v30  ;;  %v3270_v32 = vmul.f32 %v4819_v28, %v4815_v17 }
0x141e   :  { %4689 = vmatmul.mubr.msk.f32.vlgmr.msra.gmra.mxu1 %vm318_vm2, %v3270_v32 }
0x141f   :  { %4697 = vmatpush3.xpose.msk.msra.mxu1 %vm318_vm2, %v3510_v33  ;;  %4698 = vmatprep.mubr.msk.f32.mxu1 %vm4930_vm1, %v4929_v14 }
0x1420   :  { %4706 = vmatprep.subr.mxu1 %v4929_v14 }
0x1432   :  { %3271 = vrot.lane.b32.xlu0 %v5215_v13, %s4932_s2 }
0x1436   :  { %3507 = vrot.lane.b32.xlu0 %v5185_v27, %s4933_s28 }
0x14a5   :  { %v3263_v34 = vpop.xlane.xlu0 %3262 }
0x14a6   :  { %4820 = vrcp.f32 %v3263_v34 }
0x14a9   :  { %v3272_v35 = vpop.permute.xlu0 %3271 }
0x14aa   :  { %4682 = vmatpush3.msra.mxu0 %v3272_v35 }
0x14ab   :  { %4691 = vmatprep.subr.mxu0 %v3423_v41 }
0x14ad   :  { %v3508_v36 = vpop.permute.xlu0 %3507 }
0x14ae   :  { %4699 = vmatmul.mubr.msk.f32.vlgmr.msra.gmra.mxu1 %vm318_vm2, %v3508_v36 }
0x14af   :  { %4708 = vmatprep.mubr.msk.f32.mxu1 %vm4930_vm1, %v4929_v14 }
0x14b3   :  { %v4821_v37 = vpop.eup %4820 }
0x14b4   :  { %v3269_v38 = vmul.f32 %v4821_v37, %v4817_v26 }
0x14b6   :  { %4684 = vmatmul.mubr.msk.f32.vlgmr.msra.gmra.mxu0 %vm318_vm2, %v3269_v38 }
0x14b7   :  { %4692 = vmatpush3.msra.mxu0 %v3423_v41  ;;  %v3970_v41 = vld [vmem:[#allocation7 + $0x100] sm:$0xff] }
0x14b8   :  { %4701 = vmatprep.subr.mxu0 %v4929_v14 }
0x14de   :  { %v3419_v39 = vpop.f32.mrf.mxu1 }
0x14e0   :  { %v4690_v40 = vpop.f32.mrf.mxu1 }
0x14e1   :  { %v3971_v40 = vld [vmem:[#allocation7 + $0x108] sm:$0xff] }
0x156e   :  { %v3581_v27 = vpop.f32.mrf.mxu1 }
0x156f   :  { %v3663_v42 = vsel %vm318_vm2, %v3581_v27, -inf }
0x1570   :  { %3664 = vmax.xlane.f32.xlu0 %v3663_v42  ;;  %v4700_v44 = vpop.f32.mrf.mxu1  ;;  %v4068_v42 = vld [vmem:[#allocation7 + $0x150] sm:$0xff] }
0x1571   :  { %v4067_v44 = vld [vmem:[#allocation7 + $0x148] sm:$0xff] }
0x1576   :  { %v3343_v43 = vpop.f32.mrf.mxu0 }
0x1577   :  { %4693 = vmatprep.mubr.msk.f32.mxu0 %vm318_vm2, %v3343_v43 }
0x1578   :  { %v4685_v49 = vpop.f32.mrf.mxu0  ;;  %4694 = vmatmul.mubr.msk.f32.vlgmr.msra.gmra.mxu0 %vm318_vm2, %v3419_v39  ;;  %v3973_v39 = vld [vmem:[#allocation7 + $0x118] sm:$0xff] }
0x1579   :  { %4702 = vmatpush3.xpose.msk.msra.mxu0 %vm318_vm2, %v3588_v46  ;;  %4703 = vmatprep.mubr.msk.f32.mxu0 %vm4930_vm1, %v4929_v14  ;;  %v4066_v46 = vld [vmem:[#allocation7 + $0x140] sm:$0xff] }
0x157a   :  { %4711 = vmatprep.subr.mxu0 %v4929_v14 }
0x157c   :  { %4704 = vmatmul.mubr.msk.f32.vlgmr.msra.gmra.mxu0 %vm318_vm2, %v3586_v50 }
0x157d   :  { %4713 = vmatprep.mubr.msk.f32.mxu0 %vm4930_vm1, %v4929_v14 }
0x15f9   :  { %v3665_v51 = vpop.xlane.xlu0 %3664 }
0x15fa   :  { %v3669_v52 = vsub.f32 %v3581_v27, %v3665_v51  ;;  %v4069_v27 = vld [vmem:[#allocation7 + $0x158] sm:$0xff] }
0x15fc   :  { %v3671_v53 = vmul.f32 1.442695, %v3669_v52 }
0x15fe   :  { %4822 = vpow2.f32 %v3671_v53 }
0x160b   :  { %v4823_v55 = vpop.eup %4822 }
0x160c   :  { %v3675_v56 = vsel %vm318_vm2, %v4823_v55, 0.0 }
0x160d   :  { %3676 = vadd.xlane.f32.xlu0 %v3675_v56  ;;  %v4305_v56 = vld [vmem:[#allocation7 + $0x16a] ss:$0 sm:$0xff] }
0x1638   :  { %v4695_v29 = vpop.f32.mrf.mxu0 }
0x1639   :  { %v3506_v58 = vadd.f32 %v4695_v29, %v3090_v57 }
0x163a   :  { %v3496_v18 = vpop.f32.mrf.mxu0 }
0x163b   :  { %v3505_v59 = vadd.f32 %v3496_v18, %v3085_v22  ;;  %v4306_v18 = vld [vmem:[#allocation7 + $0x16b] ss:$0 sm:$0xff] }
0x163c   :  { %v3659_v21 = vpop.f32.mrf.mxu0 }
0x163d   :  { %v3666_v14 = vsel %vm318_vm2, %v3659_v21, -inf }
0x163e   :  { %3667 = vmax.xlane.f32.xlu1 %v3666_v14  ;;  %v4705_v60 = vpop.f32.mrf.mxu0 }
0x163f   :  { %v4065_v60 = vld [vmem:[#allocation7 + $0x138] sm:$0xff] }
0x164f   :  { %3761 = vrot.lane.b32.xlu1 %v5212_v11, %s4933_s28 }
0x1696   :  { %v3677_v3 = vpop.xlane.xlu0 %3676 }
0x16c7   :  { %v3668_v61 = vpop.xlane.xlu1 %3667 }
0x16c8   :  { %v3670_v62 = vsub.f32 %v3659_v21, %v3668_v61  ;;  %v4064_v61 = vld [vmem:[#allocation7 + $0x130] sm:$0xff] }
0x16ca   :  { %v3673_v63 = vmul.f32 1.442695, %v3670_v62  ;;  %v4063_v62 = vld [vmem:[#allocation7 + $0x128] sm:$0xff] }
0x16cb   :  { %v3762_v0 = vpop.permute.xlu1 %3761 }
0x16cc   :  { %4824 = vpow2.f32 %v3673_v63  ;;  %4712 = vmatpush3.msra.mxu0 %v3762_v0  ;;  %v4062_v63 = vld [vmem:[#allocation7 + $0x120] sm:$0xff]  ;;  %v4307_v0 = vld [vmem:[#allocation7 + $0x16c] ss:$0 sm:$0xff] }
0x16cd   :  { %4826 = vrcp.f32 %v3677_v3  ;;  %4721 = vmatprep.subr.mxu0 %v3973_v39 }
0x16d9   :  { %v4825_v1 = vpop.eup %4824 }
0x16da   :  { %v3678_v2 = vsel %vm318_vm2, %v4825_v1, 0.0  ;;  %v4827_v5 = vpop.eup %4826 }
0x16db   :  { %3679 = vadd.xlane.f32.xlu0 %v3678_v2  ;;  %v3683_v11 = vmul.f32 %v4827_v5, %v4823_v55 }
0x16f1   :  { %3685 = vrot.lane.b32.xlu0 %v5215_v13, %s4933_s28 }
0x1764   :  { %v3680_v4 = vpop.xlane.xlu0 %3679 }
0x1765   :  { %4828 = vrcp.f32 %v3680_v4 }
0x1768   :  { %v3686_v6 = vpop.permute.xlu0 %3685 }
0x1769   :  { %4707 = vmatpush3.msra.mxu1 %v3686_v6 }
0x176a   :  { %4709 = vmatmul.mubr.msk.f32.vlgmr.msra.gmra.mxu1 %vm318_vm2, %v3683_v11  ;;  %4716 = vmatprep.subr.mxu1 %v3837_v12  ;;  %v4310_v11 = vld [vmem:[#allocation7 + $0x16d] ss:$0 sm:$0xff] }
0x176b   :  { %4717 = vmatpush3.msra.mxu1 %v3837_v12 }
0x176c   :  { %4732 = vmatprep.subr.mxu1 %v4069_v27 }
0x1772   :  { %v4829_v8 = vpop.eup %4828 }
0x1773   :  { %v3684_v10 = vmul.f32 %v4829_v8, %v4825_v1 }
0x1775   :  { %4714 = vmatmul.mubr.msk.f32.vlgmr.msra.gmra.mxu0 %vm318_vm2, %v3684_v10 }
0x1776   :  { %4722 = vmatpush3.msra.mxu0 %v3973_v39  ;;  %v4314_v39 = vld [vmem:[#allocation7 + $0x16f] ss:$0 sm:$0xff] }
0x182a   :  { %v3757_v15 = vpop.f32.mrf.mxu1 }
0x182b   :  { %4718 = vmatprep.mubr.msk.f32.mxu1 %vm318_vm2, %v3757_v15 }
0x182c   :  { %v4710_v13 = vpop.f32.mrf.mxu1 }
0x1835   :  { %v3833_v9 = vpop.f32.mrf.mxu0 }
0x1836   :  { %4719 = vmatmul.mubr.msk.f32.vlgmr.msra.gmra.mxu1 %vm318_vm2, %v3833_v9 }
0x1837   :  { %v4715_v24 = vpop.f32.mrf.mxu0  ;;  %4733 = vmatpush3.msra.mxu1 %v4069_v27 }
0x1838   :  { %4734 = vmatprep.subr.mxu1 %v4068_v42 }
0x1839   :  { %4735 = vmatpush3.msra.mxu1 %v4068_v42 }
0x183a   :  { %4736 = vmatprep.subr.mxu1 %v4067_v44 }
0x183b   :  { %4737 = vmatpush3.msra.mxu1 %v4067_v44 }
0x183c   :  { %4738 = vmatprep.subr.mxu1 %v4066_v46 }
0x183d   :  { %4739 = vmatpush3.msra.mxu1 %v4066_v46 }
0x183e   :  { %4740 = vmatprep.subr.mxu1 %v4065_v60 }
0x183f   :  { %4741 = vmatpush3.msra.mxu1 %v4065_v60 }
0x1840   :  { %4742 = vmatprep.subr.mxu1 %v4064_v61 }
0x1841   :  { %4743 = vmatpush3.msra.mxu1 %v4064_v61 }
0x1842   :  { %4744 = vmatprep.subr.mxu1 %v4063_v62 }
0x1843   :  { %4745 = vmatpush3.msra.mxu1 %v4063_v62 }
0x1844   :  { %4746 = vmatprep.subr.mxu1 %v4062_v63 }
0x1845   :  { %4747 = vmatpush3.msra.mxu1 %v4062_v63 }
0x18f6   :  { %v4720_v7 = vpop.f32.mrf.mxu1 }
0x18f7   :  { %v3920_v31 = vadd.f32 %v4720_v7, %v3506_v58 }
0x18f8   :  { %v3910_v17 = vpop.f32.mrf.mxu1 }
0x18f9   :  { %v3927_v45 = vadd.f32 %v4304_v16, %v3920_v31  ;;  %v3919_v54 = vadd.f32 %v3910_v17, %v3505_v59 }
0x18fb   :  { %v3926_v19 = vadd.f32 %v4304_v16, %v3919_v54  ;;  %v3929_v20 = vadd.f32 %v3927_v45, %v5171_v48 }
0x18fd   :  { %v3935_v23 = vsel %vm68_vm0, %v3929_v20, 0.0  ;;  %v3928_v25 = vadd.f32 %v3926_v19, %v5169_v47  ;;  %v3972_v47 = vld [vmem:[#allocation7 + $0x110] sm:$0xff] }
0x18fe   :  { %3936 = vadd.xlane.f32.xlu0 %v3935_v23  ;;  %4723 = vmatprep.subr.mxu0 %v3972_v47 }
0x18ff   :  { %v3932_v26 = vsel %vm68_vm0, %v3928_v25, 0.0  ;;  %4724 = vmatpush3.msra.mxu0 %v3972_v47 }
0x1900   :  { %3933 = vadd.xlane.f32.xlu1 %v3932_v26  ;;  %4725 = vmatprep.subr.mxu0 %v3971_v40 }
0x1901   :  { %4726 = vmatpush3.msra.mxu0 %v3971_v40 }
0x1902   :  { %4727 = vmatprep.subr.mxu0 %v3970_v41 }
0x1903   :  { %4728 = vmatpush3.msra.mxu0 %v3970_v41 }
0x1987   :  { %v3937_v28 = vpop.xlane.xlu0 %3936 }
0x1988   :  { %v3939_v30 = vmul.f32 0.03125, %v3937_v28 }
0x1989   :  { %v3934_v32 = vpop.xlane.xlu1 %3933 }
0x198a   :  { %v3941_v33 = vsub.f32 %v3929_v20, %v3939_v30  ;;  %v3938_v34 = vmul.f32 0.03125, %v3934_v32 }
0x198c   :  { %v3940_v35 = vsub.f32 %v3928_v25, %v3938_v34  ;;  %v3943_v36 = vmul.f32 %v3941_v33, %v3941_v33 }
0x198e   :  { %v3947_v37 = vsel %vm68_vm0, %v3943_v36, 0.0  ;;  %v3942_v38 = vmul.f32 %v3940_v35, %v3940_v35 }
0x198f   :  { %3948 = vadd.xlane.f32.xlu1 %v3947_v37  ;;  %v4313_v37 = vld [vmem:[#allocation7 + $0x16e] ss:$0 sm:$0xff] }
0x1990   :  { %v3944_v48 = vsel %vm68_vm0, %v3942_v38, 0.0 }
0x1991   :  { %3945 = vadd.xlane.f32.xlu0 %v3944_v48 }
0x1a18   :  { %v3949_v43 = vpop.xlane.xlu1 %3948 }
0x1a19   :  { %v3951_v49 = vmul.f32 0.03125, %v3949_v43 }
0x1a1a   :  { %v3946_v50 = vpop.xlane.xlu0 %3945 }
0x1a1b   :  { %v3953_v51 = vadd.f32 1e-05, %v3951_v49  ;;  %v3950_v52 = vmul.f32 0.03125, %v3946_v50 }
0x1a1d   :  { %4830 = vrsqrt.f32 %v3953_v51  ;;  %v3952_v53 = vadd.f32 1e-05, %v3950_v52 }
0x1a1f   :  { %4832 = vrsqrt.f32 %v3952_v53 }
0x1a2a   :  { %v4831_v55 = vpop.eup %4830 }
0x1a2b   :  { %v3957_v57 = vmul.f32 %v4831_v55, %v3941_v33 }
0x1a2c   :  { %v4833_v29 = vpop.eup %4832 }
0x1a2d   :  { %v3956_v22 = vmul.f32 %v4833_v29, %v3940_v35  ;;  %v3963_v58 = vmul.f32 %v4305_v56, %v3957_v57 }
0x1a2f   :  { %v3962_v59 = vmul.f32 %v4305_v56, %v3956_v22  ;;  %v3969_v14 = vadd.f32 %v4306_v18, %v3963_v58 }
0x1a31   :  { %v3968_v21 = vadd.f32 %v4306_v18, %v3962_v59 }
0x1a33   :  { %4729 = vmatprep.mubr.msk.f32.mxu0 %vm68_vm0, %v3968_v21 }
0x1a34   :  { %4730 = vmatmul.mubr.msk.f32.vlgmr.msra.gmra.mxu0 %vm68_vm0, %v3969_v14 }
0x1af4   :  { %v4731_v1 = vpop.f32.mrf.mxu0 }
0x1af5   :  { %v4057_v2 = vadd.f32 %v4731_v1, %v4307_v0 }
0x1af6   :  { %v4051_v3 = vpop.f32.mrf.mxu0 }
0x1af7   :  { %v4052_v4 = vadd.f32 %v4307_v0, %v4051_v3  ;;  %v4061_v6 = vmax.f32 %v4057_v2, 0.0 }
0x1af9   :  { %v4060_v5 = vmax.f32 %v4052_v4, 0.0 }
0x1afb   :  { %4748 = vmatprep.mubr.msk.f32.mxu1 %vm4075_vm3, %v4060_v5 }
0x1afc   :  { %4749 = vmatmul.mubr.msk.f32.vlgmr.msra.gmra.mxu1 %vm4075_vm3, %v4061_v6 }
0x1bbc   :  { %v4750_v8 = vpop.f32.mrf.mxu1 }
0x1bbd   :  { %v4154_v10 = vadd.f32 %v4750_v8, %v4310_v11 }
0x1bbe   :  { %v4148_v12 = vpop.f32.mrf.mxu1 }
0x1bbf   :  { %v4149_v15 = vadd.f32 %v4310_v11, %v4148_v12  ;;  %v4158_v13 = vadd.f32 %v4154_v10, %v3969_v14 }
0x1bc1   :  { %v4164_v9 = vsel %vm68_vm0, %v4158_v13, 0.0  ;;  %v4157_v24 = vadd.f32 %v4149_v15, %v3968_v21 }
0x1bc2   :  { %4165 = vadd.xlane.f32.xlu1 %v4164_v9 }
0x1bc3   :  { %v4161_v7 = vsel %vm68_vm0, %v4157_v24, 0.0 }
0x1bc4   :  { %4162 = vadd.xlane.f32.xlu0 %v4161_v7 }
0x1c4b   :  { %v4166_v16 = vpop.xlane.xlu1 %4165 }
0x1c4c   :  { %v4168_v31 = vmul.f32 0.03125, %v4166_v16 }
0x1c4d   :  { %v4163_v17 = vpop.xlane.xlu0 %4162 }
0x1c4e   :  { %v4170_v45 = vsub.f32 %v4158_v13, %v4168_v31  ;;  %v4167_v54 = vmul.f32 0.03125, %v4163_v17 }
0x1c50   :  { %v4169_v19 = vsub.f32 %v4157_v24, %v4167_v54  ;;  %v4172_v20 = vmul.f32 %v4170_v45, %v4170_v45 }
0x1c52   :  { %v4176_v23 = vsel %vm68_vm0, %v4172_v20, 0.0  ;;  %v4171_v25 = vmul.f32 %v4169_v19, %v4169_v19 }
0x1c53   :  { %4177 = vadd.xlane.f32.xlu1 %v4176_v23 }
0x1c54   :  { %v4173_v26 = vsel %vm68_vm0, %v4171_v25, 0.0 }
0x1c55   :  { %4174 = vadd.xlane.f32.xlu0 %v4173_v26 }
0x1cdc   :  { %v4178_v28 = vpop.xlane.xlu1 %4177 }
0x1cdd   :  { %v4180_v30 = vmul.f32 0.03125, %v4178_v28 }
0x1cde   :  { %v4175_v32 = vpop.xlane.xlu0 %4174 }
0x1cdf   :  { %v4182_v33 = vadd.f32 1e-05, %v4180_v30  ;;  %v4179_v34 = vmul.f32 0.03125, %v4175_v32 }
0x1ce1   :  { %4834 = vrsqrt.f32 %v4182_v33  ;;  %v4181_v35 = vadd.f32 1e-05, %v4179_v34 }
0x1ce3   :  { %4836 = vrsqrt.f32 %v4181_v35 }
0x1cee   :  { %v4835_v36 = vpop.eup %4834 }
0x1cef   :  { %v4186_v38 = vmul.f32 %v4835_v36, %v4170_v45 }
0x1cf0   :  { %v4837_v48 = vpop.eup %4836 }
0x1cf1   :  { %v4185_v47 = vmul.f32 %v4837_v48, %v4169_v19  ;;  %v4192_v40 = vmul.f32 %v4313_v37, %v4186_v38 }
0x1cf3   :  { %v4191_v41 = vmul.f32 %v4313_v37, %v4185_v47  ;;  %v4198_v27 = vadd.f32 %v4314_v39, %v4192_v40 }
0x1cf5   :  { %v4197_v42 = vadd.f32 %v4314_v39, %v4191_v41  ;;  %4200 = vst.msk [vmem:[#allocation8 + $0x8] sm:$0xff] %vm68_vm0, %v4198_v27 }
0x1cf7   :  { %4199 = vst.msk [vmem:[#allocation8] sm:$0xff] %vm68_vm0, %v4197_v42 }
0x1cf8   :  { %4909 = shalt.err (!%p4906_p5)
}
0x1cf9   :  { %4212 = dma.vmem_to_hbm [thread:$0]  %s4207_s30, 256, %s5361_s3, [#allocation4], %s4926_s20, %s4926_s20, %s4927_s21  }
0x1cfa   :  { %4922 = dma.done.wait [#allocation4], 256  }
0x1cfb   :  { %4923 = vsyncadd [#allocation4], 4294967040 }
0x1cfc   :  { %4216 = vsyncpa [#allocation3], 1 }
0x1cfd   :  { %4217 = vsyncpa [#allocation6], 1 }
0x1cfe   :  { %4218 = vsyncpa [#allocation4], 1 }

</bundles_post_ra>
